<compile_context>
chip_gen: v6e
topology: v6e:2x2x1
jax: 0.10.0
libtpu: 0.0.40
codegen_flags: <defaults>
</compile_context>

<pallas_src>
import functools

import jax
import jax.numpy as jnp
from jax import lax
from jax.experimental import pallas as pl
from jax.experimental.pallas import tpu as pltpu


def cnn_kernel(dims, p1_ref, w_ref, pack_ref, o_ref):
    """Fused forward pass.

    p1_ref   (B*H1*W1, K1P)  bf16  im2col patches of the NHWC input (conv1 LHS)
    w_ref    (K1P+K2P+FCK, 128) bf16  weight slab:
               rows [0:K1P)        conv1 im2col weight (BN scale folded), lanes 0:C2
               rows [K1P:K1P+K2P)  conv2 im2col weight (BN scale folded), lanes 0:C3
               rows [K1P+K2P: +FCK) fc weight (NHWC-pooled row order), lanes 0:OS
    pack_ref (3, 128)        f32   row0 = conv1 shift t1', row1 = conv2 shift t2',
                                   row2 = fc bias (all zero-padded to 128 lanes)
    o_ref    (BP, 128)       f32   lane/sublane-dense padded output tile
    """
    (B, H1, W1, C2, H2, W2, C3, Hp, Wp, OS, K1P, K2P, BP) = dims
    K2 = 9 * C2
    FCK = Hp * Wp * C3
    OFF2 = K1P
    OFFF = K1P + K2P

    # ---- conv1: one im2col MXU matmul, folded BN shift, ReLU (f32 elementwise) ----
    acc1 = jnp.dot(p1_ref[...], w_ref[0:K1P, 0:C2],
                   preferred_element_type=jnp.float32)              # (B*H1*W1, C2)
    y1 = jnp.maximum(acc1 + pack_ref[0:1, 0:C2], 0.0)               # f32
    y1b = y1.astype(jnp.bfloat16).reshape(B, H1, W1, C2)            # single bf16 cast

    # ---- conv2: single im2col matmul (9 taps concatenated, K padded to 128) ----
    taps = [y1b[:, dy:dy + H2, dx:dx + W2, :].reshape(B * H2 * W2, C2)
            for dy in range(3) for dx in range(3)]
    if K2P > K2:
        taps.append(jnp.zeros((B * H2 * W2, K2P - K2), jnp.bfloat16))
    patches2 = jnp.concatenate(taps, axis=-1)                       # (B*H2*W2, K2P)
    acc2 = jnp.dot(patches2, w_ref[OFF2:OFF2 + K2P, 0:C3],
                   preferred_element_type=jnp.float32)              # (B*H2*W2, C3)
    y2 = jnp.maximum(acc2 + pack_ref[1:2, 0:C3], 0.0).reshape(B, H2, W2, C3)

    # ---- maxpool 2x2 stride 2 (vectorized row maxes), fused into ONE FC matmul ----
    # TODO(synk): Dropout(0.3) is identity in eval mode; training-mode stochastic
    # mask is not implemented.
    pcols = []
    for i in range(Hp):
        r = jnp.maximum(y2[:, 2 * i, :, :], y2[:, 2 * i + 1, :, :])     # (B, W2, C3)
        for j in range(Wp):
            pcols.append(jnp.maximum(r[:, 2 * j, :], r[:, 2 * j + 1, :]))  # (B, C3)
    pooled = jnp.concatenate(pcols, axis=-1).astype(jnp.bfloat16)       # (B, FCK)
    if BP > B:
        pooled = jnp.concatenate(
            [pooled, jnp.zeros((BP - B, FCK), jnp.bfloat16)], axis=0)   # (BP, FCK)

    out = jnp.dot(pooled, w_ref[OFFF:OFFF + FCK, :],
                  preferred_element_type=jnp.float32)                   # (BP, 128)
    o_ref[...] = out + pack_ref[2:3, :]                                 # full-tile store


def _prepare_params(params, output_size, input_shape):
    """One-time weight-side preprocessing (runs once, outside the per-call path)."""
    eps = 1e-5
    _, C1, H, W = input_shape
    C2 = params['conv1_w'].shape[0]
    C3 = params['conv2_w'].shape[0]
    H1, W1 = H - 2, W - 2
    H2, W2 = H1 - 2, W1 - 2
    Hp, Wp = H2 // 2, W2 // 2
    OS = output_size

    # Fold BatchNorm (running stats, eval mode) and conv bias:
    #   relu(bn(conv(x, w) + b)) = relu(conv(x, w*s) + t'),
    #   s = gamma / sqrt(var + eps),  t' = beta + (b - mean) * s
    s1 = params['bn1_gamma'] / jnp.sqrt(params['bn1_var'] + eps)
    t1 = params['bn1_beta'] + (params['conv1_b'] - params['bn1_mean']) * s1
    s2 = params['bn2_gamma'] / jnp.sqrt(params['bn2_var'] + eps)
    t2 = params['bn2_beta'] + (params['conv2_b'] - params['bn2_mean']) * s2

    # PyTorch OIHW -> HWIO, BN scale folded into output channels
    w1 = jnp.transpose(params['conv1_w'], (2, 3, 1, 0)) * s1            # (3,3,C1,C2)
    w2 = jnp.transpose(params['conv2_w'], (2, 3, 1, 0)) * s2            # (3,3,C2,C3)

    K1, K2 = 9 * C1, 9 * C2
    K1P = ((K1 + 127) // 128) * 128
    K2P = ((K2 + 127) // 128) * 128
    FCK = Hp * Wp * C3
    LW = 128                                                            # slab lane width

    w1_mat = jnp.zeros((K1P, LW), jnp.float32).at[:K1, :C2].set(w1.reshape(K1, C2))
    w2_mat = jnp.zeros((K2P, LW), jnp.float32).at[:K2, :C3].set(w2.reshape(K2, C3))

    # fc weight: (OS, C3*Hp*Wp) in PyTorch NCHW-flatten order -> rows grouped by
    # pooled NHWC position: row (i*Wp + j)*C3 + c; lanes zero-padded OS -> 128.
    wf = params['fc_w'].reshape(OS, C3, Hp, Wp)
    wf = jnp.transpose(wf, (2, 3, 1, 0)).reshape(FCK, OS)
    wf_mat = jnp.zeros((FCK, LW), jnp.float32).at[:, :OS].set(wf)

    wslab = jnp.concatenate([w1_mat, w2_mat, wf_mat], axis=0).astype(jnp.bfloat16)

    pack = jnp.zeros((3, LW), jnp.float32)
    pack = pack.at[0, :C2].set(t1)
    pack = pack.at[1, :C3].set(t2)
    pack = pack.at[2, :OS].set(params['fc_b'])
    return wslab, pack


def make_cnn_forward(params, output_size, input_shape):
    """Build a jitted forward(x_nchw) with all weight-side prep hoisted out."""
    wslab, pack = _prepare_params(params, output_size, input_shape)

    B, C1, H, W = input_shape
    C2 = params['conv1_w'].shape[0]
    C3 = params['conv2_w'].shape[0]
    H1, W1 = H - 2, W - 2
    H2, W2 = H1 - 2, W1 - 2
    Hp, Wp = H2 // 2, W2 // 2
    OS = output_size
    K1 = 9 * C1
    K1P = ((K1 + 127) // 128) * 128
    K2P = ((9 * C2 + 127) // 128) * 128
    BP = ((B + 7) // 8) * 8                                             # sublane-dense out

    dims = (B, H1, W1, C2, H2, W2, C3, Hp, Wp, OS, K1P, K2P, BP)
    pallas_fn = pl.pallas_call(
        functools.partial(cnn_kernel, dims),
        out_shape=jax.ShapeDtypeStruct((BP, 128), jnp.float32),
        in_specs=[pl.BlockSpec(memory_space=pltpu.MemorySpace.VMEM)] * 3,
        out_specs=pl.BlockSpec(memory_space=pltpu.MemorySpace.VMEM),
    )

    @jax.jit
    def forward(x_nchw):
        x = jnp.transpose(x_nchw, (0, 2, 3, 1)).astype(jnp.float32)     # NCHW -> NHWC
        patches = jnp.concatenate(
            [x[:, dy:dy + H1, dx:dx + W1, :] for dy in range(3) for dx in range(3)],
            axis=-1).reshape(B * H1 * W1, K1)
        patches = jnp.pad(patches, ((0, 0), (0, K1P - K1))).astype(jnp.bfloat16)
        out = pallas_fn(patches, wslab, pack)
        return out[:B, :OS]

    return forward


def reference_forward(x_nchw, params, output_size):
    """Pure-JAX f32 reference with PyTorch (NCHW) semantics, BN in eval mode."""
    eps = 1e-5

    def conv(x, w, b):
        y = lax.conv_general_dilated(x, w, (1, 1), 'VALID',
                                     dimension_numbers=('NCHW', 'OIHW', 'NCHW'))
        return y + b.reshape(1, -1, 1, 1)

    def bn(x, g, bt, m, v):
        return ((x - m.reshape(1, -1, 1, 1)) / jnp.sqrt(v.reshape(1, -1, 1, 1) + eps)
                * g.reshape(1, -1, 1, 1) + bt.reshape(1, -1, 1, 1))

    y = jax.nn.relu(bn(conv(x_nchw, params['conv1_w'], params['conv1_b']),
                       params['bn1_gamma'], params['bn1_beta'],
                       params['bn1_mean'], params['bn1_var']))
    y = jax.nn.relu(bn(conv(y, params['conv2_w'], params['conv2_b']),
                       params['bn2_gamma'], params['bn2_beta'],
                       params['bn2_mean'], params['bn2_var']))
    y = lax.reduce_window(y, -jnp.inf, lax.max, (1, 1, 2, 2), (1, 1, 2, 2), 'VALID')
    flat = y.reshape(y.shape[0], -1)                  # NCHW flatten, like x.view(B, -1)
    return flat @ params['fc_w'].T + params['fc_b']


if __name__ == "__main__":
    output_size = 2
    key = jax.random.PRNGKey(0)
    ks = jax.random.split(key, 16)

    # deterministic synthetic parameters (shapes from the nn.Module __init__)
    params = {
        'conv1_w':  0.10 * jax.random.normal(ks[0],  (8, 6, 3, 3),  jnp.float32),
        'conv1_b':  0.10 * jax.random.normal(ks[1],  (8,),          jnp.float32),
        'bn1_gamma': 1.0 + 0.10 * jax.random.normal(ks[2], (8,),    jnp.float32),
        'bn1_beta':  0.10 * jax.random.normal(ks[3], (8,),          jnp.float32),
        'bn1_mean':  0.05 * jax.random.normal(ks[4], (8,),          jnp.float32),
        'bn1_var':   1.0 + 0.10 * jnp.abs(jax.random.normal(ks[5], (8,), jnp.float32)),
        'conv2_w':  0.10 * jax.random.normal(ks[6],  (64, 8, 3, 3), jnp.float32),
        'conv2_b':  0.10 * jax.random.normal(ks[7],  (64,),         jnp.float32),
        'bn2_gamma': 1.0 + 0.10 * jax.random.normal(ks[8], (64,),   jnp.float32),
        'bn2_beta':  0.10 * jax.random.normal(ks[9], (64,),         jnp.float32),
        'bn2_mean':  0.05 * jax.random.normal(ks[10], (64,),        jnp.float32),
        'bn2_var':   1.0 + 0.10 * jnp.abs(jax.random.normal(ks[11], (64,), jnp.float32)),
        'fc_w':     0.05 * jax.random.normal(ks[12], (output_size, 384), jnp.float32),
        'fc_b':     0.05 * jax.random.normal(ks[13], (output_size,),     jnp.float32),
    }

    # input: NCHW (B=2, C=6, H=8, W=10) so that 64 * ((8-4)//2) * ((10-4)//2) = 384
    x = jax.random.normal(ks[14], (2, 6, 8, 10), jnp.float32)

    forward = make_cnn_forward(params, output_size, x.shape)
    out = jax.block_until_ready(forward(x))
    ref = jax.block_until_ready(reference_forward(x, params, output_size))

    assert out.shape == (2, output_size)
    # Kernel uses bf16 MXU operands with f32 accumulation; tolerance sized for
    # bf16-level error through three stacked matmuls vs. the all-f32 reference.
    assert jnp.allclose(out, ref, atol=5e-2, rtol=5e-2), (out, ref)

    print("KERNEL_OK")
</pallas_src>

<mosaic_0001>
module attributes {stable_mosaic.version = 11 : i64} {
  func.func @cnn_kernel(%arg0: memref<96x128xbf16, #tpu.memory_space<vmem>>, %arg1: memref<640x128xbf16, #tpu.memory_space<vmem>>, %arg2: memref<3x128xf32, #tpu.memory_space<vmem>>, %arg3: memref<8x128xf32, #tpu.memory_space<vmem>>) attributes {dimension_semantics = [], scalar_prefetch = 0 : i64, scratch_operands = 0 : i64, tpu.core_type = #tpu.core_type<tc>} {
    %c0 = arith.constant 0 : index
    %c0_0 = arith.constant 0 : index
    %0 = vector.load %arg0[%c0, %c0_0] : memref<96x128xbf16, #tpu.memory_space<vmem>>, vector<96x128xbf16>
    %c0_1 = arith.constant 0 : index
    %c0_2 = arith.constant 0 : index
    %1 = vector.load %arg1[%c0_1, %c0_2] : memref<640x128xbf16, #tpu.memory_space<vmem>>, vector<128x8xbf16>
    %cst = arith.constant dense<0.000000e+00> : vector<96x8xf32>
    %2 = tpu.matmul %0, %1, %cst {dimension_numbers = #tpu.dot_dimension_numbers<[1], [0], [0], [1], [0, 0, 1, 1], [], []>} : vector<96x128xbf16>, vector<128x8xbf16>, vector<96x8xf32> -> vector<96x8xf32>
    %c0_3 = arith.constant 0 : index
    %c0_4 = arith.constant 0 : index
    %3 = vector.load %arg2[%c0_3, %c0_4] : memref<3x128xf32, #tpu.memory_space<vmem>>, vector<1x8xf32>
    %4 = vector.broadcast %3 : vector<1x8xf32> to vector<96x8xf32>
    %5 = arith.addf %2, %4 : vector<96x8xf32>
    %cst_5 = arith.constant 0.000000e+00 : f32
    %6 = vector.broadcast %cst_5 : f32 to vector<96x8xf32>
    %7 = arith.maximumf %5, %6 : vector<96x8xf32>
    %8 = arith.truncf %7 : vector<96x8xf32> to vector<96x8xbf16>
    %9 = vector.shape_cast %8 : vector<96x8xbf16> to vector<2x6x8x8xbf16>
    %10 = vector.extract_strided_slice %9 {offsets = [0, 0, 0, 0], sizes = [2, 4, 6, 8], strides = [1, 1, 1, 1]} : vector<2x6x8x8xbf16> to vector<2x4x6x8xbf16>
    %11 = vector.shape_cast %10 : vector<2x4x6x8xbf16> to vector<48x8xbf16>
    %12 = vector.extract_strided_slice %9 {offsets = [0, 0, 1, 0], sizes = [2, 4, 6, 8], strides = [1, 1, 1, 1]} : vector<2x6x8x8xbf16> to vector<2x4x6x8xbf16>
    %13 = vector.shape_cast %12 : vector<2x4x6x8xbf16> to vector<48x8xbf16>
    %14 = vector.extract_strided_slice %9 {offsets = [0, 0, 2, 0], sizes = [2, 4, 6, 8], strides = [1, 1, 1, 1]} : vector<2x6x8x8xbf16> to vector<2x4x6x8xbf16>
    %15 = vector.shape_cast %14 : vector<2x4x6x8xbf16> to vector<48x8xbf16>
    %16 = vector.extract_strided_slice %9 {offsets = [0, 1, 0, 0], sizes = [2, 4, 6, 8], strides = [1, 1, 1, 1]} : vector<2x6x8x8xbf16> to vector<2x4x6x8xbf16>
    %17 = vector.shape_cast %16 : vector<2x4x6x8xbf16> to vector<48x8xbf16>
    %18 = vector.extract_strided_slice %9 {offsets = [0, 1, 1, 0], sizes = [2, 4, 6, 8], strides = [1, 1, 1, 1]} : vector<2x6x8x8xbf16> to vector<2x4x6x8xbf16>
    %19 = vector.shape_cast %18 : vector<2x4x6x8xbf16> to vector<48x8xbf16>
    %20 = vector.extract_strided_slice %9 {offsets = [0, 1, 2, 0], sizes = [2, 4, 6, 8], strides = [1, 1, 1, 1]} : vector<2x6x8x8xbf16> to vector<2x4x6x8xbf16>
    %21 = vector.shape_cast %20 : vector<2x4x6x8xbf16> to vector<48x8xbf16>
    %22 = vector.extract_strided_slice %9 {offsets = [0, 2, 0, 0], sizes = [2, 4, 6, 8], strides = [1, 1, 1, 1]} : vector<2x6x8x8xbf16> to vector<2x4x6x8xbf16>
    %23 = vector.shape_cast %22 : vector<2x4x6x8xbf16> to vector<48x8xbf16>
    %24 = vector.extract_strided_slice %9 {offsets = [0, 2, 1, 0], sizes = [2, 4, 6, 8], strides = [1, 1, 1, 1]} : vector<2x6x8x8xbf16> to vector<2x4x6x8xbf16>
    %25 = vector.shape_cast %24 : vector<2x4x6x8xbf16> to vector<48x8xbf16>
    %26 = vector.extract_strided_slice %9 {offsets = [0, 2, 2, 0], sizes = [2, 4, 6, 8], strides = [1, 1, 1, 1]} : vector<2x6x8x8xbf16> to vector<2x4x6x8xbf16>
    %27 = vector.shape_cast %26 : vector<2x4x6x8xbf16> to vector<48x8xbf16>
    %cst_6 = arith.constant 0.000000e+00 : bf16
    %28 = vector.broadcast %cst_6 : bf16 to vector<48x56xbf16>
    %29 = tpu.concatenate %11, %13, %15, %17, %19, %21, %23, %25, %27, %28 in 1 : vector<48x8xbf16>, vector<48x8xbf16>, vector<48x8xbf16>, vector<48x8xbf16>, vector<48x8xbf16>, vector<48x8xbf16>, vector<48x8xbf16>, vector<48x8xbf16>, vector<48x8xbf16>, vector<48x56xbf16> -> vector<48x128xbf16>
    %c128 = arith.constant 128 : index
    %c0_7 = arith.constant 0 : index
    %30 = vector.load %arg1[%c128, %c0_7] : memref<640x128xbf16, #tpu.memory_space<vmem>>, vector<128x64xbf16>
    %cst_8 = arith.constant dense<0.000000e+00> : vector<48x64xf32>
    %31 = tpu.matmul %29, %30, %cst_8 {dimension_numbers = #tpu.dot_dimension_numbers<[1], [0], [0], [1], [0, 0, 1, 1], [], []>} : vector<48x128xbf16>, vector<128x64xbf16>, vector<48x64xf32> -> vector<48x64xf32>
    %c1 = arith.constant 1 : index
    %c0_9 = arith.constant 0 : index
    %32 = vector.load %arg2[%c1, %c0_9] : memref<3x128xf32, #tpu.memory_space<vmem>>, vector<1x64xf32>
    %33 = vector.broadcast %32 : vector<1x64xf32> to vector<48x64xf32>
    %34 = arith.addf %31, %33 : vector<48x64xf32>
    %cst_10 = arith.constant 0.000000e+00 : f32
    %35 = vector.broadcast %cst_10 : f32 to vector<48x64xf32>
    %36 = arith.maximumf %34, %35 : vector<48x64xf32>
    %37 = vector.shape_cast %36 : vector<48x64xf32> to vector<2x4x6x64xf32>
    %38 = vector.extract_strided_slice %37 {offsets = [0, 0, 0, 0], sizes = [2, 1, 6, 64], strides = [1, 1, 1, 1]} : vector<2x4x6x64xf32> to vector<2x1x6x64xf32>
    %39 = vector.shape_cast %38 : vector<2x1x6x64xf32> to vector<2x6x64xf32>
    %40 = vector.extract_strided_slice %37 {offsets = [0, 1, 0, 0], sizes = [2, 1, 6, 64], strides = [1, 1, 1, 1]} : vector<2x4x6x64xf32> to vector<2x1x6x64xf32>
    %41 = vector.shape_cast %40 : vector<2x1x6x64xf32> to vector<2x6x64xf32>
    %42 = arith.maximumf %39, %41 : vector<2x6x64xf32>
    %43 = vector.extract_strided_slice %42 {offsets = [0, 0, 0], sizes = [2, 1, 64], strides = [1, 1, 1]} : vector<2x6x64xf32> to vector<2x1x64xf32>
    %44 = vector.shape_cast %43 : vector<2x1x64xf32> to vector<2x64xf32>
    %45 = vector.extract_strided_slice %42 {offsets = [0, 1, 0], sizes = [2, 1, 64], strides = [1, 1, 1]} : vector<2x6x64xf32> to vector<2x1x64xf32>
    %46 = vector.shape_cast %45 : vector<2x1x64xf32> to vector<2x64xf32>
    %47 = arith.maximumf %44, %46 : vector<2x64xf32>
    %48 = vector.extract_strided_slice %42 {offsets = [0, 2, 0], sizes = [2, 1, 64], strides = [1, 1, 1]} : vector<2x6x64xf32> to vector<2x1x64xf32>
    %49 = vector.shape_cast %48 : vector<2x1x64xf32> to vector<2x64xf32>
    %50 = vector.extract_strided_slice %42 {offsets = [0, 3, 0], sizes = [2, 1, 64], strides = [1, 1, 1]} : vector<2x6x64xf32> to vector<2x1x64xf32>
    %51 = vector.shape_cast %50 : vector<2x1x64xf32> to vector<2x64xf32>
    %52 = arith.maximumf %49, %51 : vector<2x64xf32>
    %53 = vector.extract_strided_slice %42 {offsets = [0, 4, 0], sizes = [2, 1, 64], strides = [1, 1, 1]} : vector<2x6x64xf32> to vector<2x1x64xf32>
    %54 = vector.shape_cast %53 : vector<2x1x64xf32> to vector<2x64xf32>
    %55 = vector.extract_strided_slice %42 {offsets = [0, 5, 0], sizes = [2, 1, 64], strides = [1, 1, 1]} : vector<2x6x64xf32> to vector<2x1x64xf32>
    %56 = vector.shape_cast %55 : vector<2x1x64xf32> to vector<2x64xf32>
    %57 = arith.maximumf %54, %56 : vector<2x64xf32>
    %58 = vector.extract_strided_slice %37 {offsets = [0, 2, 0, 0], sizes = [2, 1, 6, 64], strides = [1, 1, 1, 1]} : vector<2x4x6x64xf32> to vector<2x1x6x64xf32>
    %59 = vector.shape_cast %58 : vector<2x1x6x64xf32> to vector<2x6x64xf32>
    %60 = vector.extract_strided_slice %37 {offsets = [0, 3, 0, 0], sizes = [2, 1, 6, 64], strides = [1, 1, 1, 1]} : vector<2x4x6x64xf32> to vector<2x1x6x64xf32>
    %61 = vector.shape_cast %60 : vector<2x1x6x64xf32> to vector<2x6x64xf32>
    %62 = arith.maximumf %59, %61 : vector<2x6x64xf32>
    %63 = vector.extract_strided_slice %62 {offsets = [0, 0, 0], sizes = [2, 1, 64], strides = [1, 1, 1]} : vector<2x6x64xf32> to vector<2x1x64xf32>
    %64 = vector.shape_cast %63 : vector<2x1x64xf32> to vector<2x64xf32>
    %65 = vector.extract_strided_slice %62 {offsets = [0, 1, 0], sizes = [2, 1, 64], strides = [1, 1, 1]} : vector<2x6x64xf32> to vector<2x1x64xf32>
    %66 = vector.shape_cast %65 : vector<2x1x64xf32> to vector<2x64xf32>
    %67 = arith.maximumf %64, %66 : vector<2x64xf32>
    %68 = vector.extract_strided_slice %62 {offsets = [0, 2, 0], sizes = [2, 1, 64], strides = [1, 1, 1]} : vector<2x6x64xf32> to vector<2x1x64xf32>
    %69 = vector.shape_cast %68 : vector<2x1x64xf32> to vector<2x64xf32>
    %70 = vector.extract_strided_slice %62 {offsets = [0, 3, 0], sizes = [2, 1, 64], strides = [1, 1, 1]} : vector<2x6x64xf32> to vector<2x1x64xf32>
    %71 = vector.shape_cast %70 : vector<2x1x64xf32> to vector<2x64xf32>
    %72 = arith.maximumf %69, %71 : vector<2x64xf32>
    %73 = vector.extract_strided_slice %62 {offsets = [0, 4, 0], sizes = [2, 1, 64], strides = [1, 1, 1]} : vector<2x6x64xf32> to vector<2x1x64xf32>
    %74 = vector.shape_cast %73 : vector<2x1x64xf32> to vector<2x64xf32>
    %75 = vector.extract_strided_slice %62 {offsets = [0, 5, 0], sizes = [2, 1, 64], strides = [1, 1, 1]} : vector<2x6x64xf32> to vector<2x1x64xf32>
    %76 = vector.shape_cast %75 : vector<2x1x64xf32> to vector<2x64xf32>
    %77 = arith.maximumf %74, %76 : vector<2x64xf32>
    %78 = tpu.concatenate %47, %52, %57, %67, %72, %77 in 1 : vector<2x64xf32>, vector<2x64xf32>, vector<2x64xf32>, vector<2x64xf32>, vector<2x64xf32>, vector<2x64xf32> -> vector<2x384xf32>
    %79 = arith.truncf %78 : vector<2x384xf32> to vector<2x384xbf16>
    %cst_11 = arith.constant 0.000000e+00 : bf16
    %80 = vector.broadcast %cst_11 : bf16 to vector<6x384xbf16>
    %81 = tpu.concatenate %79, %80 in 0 : vector<2x384xbf16>, vector<6x384xbf16> -> vector<8x384xbf16>
    %c256 = arith.constant 256 : index
    %c0_12 = arith.constant 0 : index
    %82 = vector.load %arg1[%c256, %c0_12] : memref<640x128xbf16, #tpu.memory_space<vmem>>, vector<384x128xbf16>
    %cst_13 = arith.constant dense<0.000000e+00> : vector<8x128xf32>
    %83 = tpu.matmul %81, %82, %cst_13 {dimension_numbers = #tpu.dot_dimension_numbers<[1], [0], [0], [1], [0, 0, 1, 1], [], []>} : vector<8x384xbf16>, vector<384x128xbf16>, vector<8x128xf32> -> vector<8x128xf32>
    %c2 = arith.constant 2 : index
    %c0_14 = arith.constant 0 : index
    %84 = vector.load %arg2[%c2, %c0_14] : memref<3x128xf32, #tpu.memory_space<vmem>>, vector<1x128xf32>
    %85 = vector.broadcast %84 : vector<1x128xf32> to vector<8x128xf32>
    %86 = arith.addf %83, %85 : vector<8x128xf32>
    %c0_15 = arith.constant 0 : index
    %c0_16 = arith.constant 0 : index
    %87 = vector.load %arg3[%c0_15, %c0_16] : memref<8x128xf32, #tpu.memory_space<vmem>>, vector<8x128xf32>
    tpu.vector_store %arg3[%c0_15, %c0_16], %86 {strides = array<i32>} : memref<8x128xf32, #tpu.memory_space<vmem>>, vector<8x128xf32>,
    return
  }
}

</mosaic_0001>

<bundles_post_ra>
// kernel: forward.1
= control target key start
LH: loop header
LB: loop body
LE: loop exit
PB: predicated region body
PF: predicated region fallthrough
CT: control target
= control target key end

     0   :  { %v3139_v14 = vmov 1966171168   ;;  %v264_v16 = vlaneseq  ;;  %vm453_vm0 = vsmask.f32 256  ;;  %vm454_vm1 = vsmask.f32 1284  ;;  %s4143_s1 = inlined_call_operand.vmem [shape: bf16[640,128], index: 1, kind: input, shape index: {}]   ;;  %s4144_s0 = inlined_call_operand.vmem [shape: bf16[96,128], index: 0, kind: input, shape index: {}]   ;;  %s4145_s2 = inlined_call_operand.vmem [shape: f32[3,128], index: 2, kind: input, shape index: {}]   ;;  %s4146_s3 = inlined_call_operand.vmem [shape: f32[8,128], index: 3, kind: output, shape index: {}]  }
   0x1   :  { %v3093_v0 = vld [vmem:[%s4143_s1 + $0x38] sm:$0xff]   ;;  %v3094_v1 = vld [vmem:[%s4143_s1 + $0x30] sm:$0xff]   ;;  %v3095_v2 = vld [vmem:[%s4143_s1 + $0x28] sm:$0xff]   ;;  %v262_v15 = vunpack.c.l.s4 %v3139_v14  ;;  %vm456_vm2 = vsmask.f32 2312  ;;  %s3141_s15 = smov 16  }
   0x2   :  { %3000 = vmatprep.subr.bf16.mxu0 %v3093_v0  ;;  %v3096_v3 = vld [vmem:[%s4143_s1 + $0x20] sm:$0xff]   ;;  %v3097_v5 = vld [vmem:[%s4143_s1 + $0x18] sm:$0xff]   ;;  %v3098_v6 = vld [vmem:[%s4143_s1 + $0x10] sm:$0xff]   ;;  %v3218_v19 = vshrl.u32 %v264_v16, 7  ;;  %vm458_vm3 = vsmask.f32 3340 }
   0x3   :  { %3001 = vmatpush3.bf16.msra.mxu0 %v3093_v0  ;;  %v3101_v4 = vld [vmem:[%s4144_s0] sm:$0xff]   ;;  %v3099_v7 = vld [vmem:[%s4143_s1 + $0x8] sm:$0xff]   ;;  %v3103_v10 = vld [vmem:[%s4144_s0 + $0x10] sm:$0xff]   ;;  %v263_v18 = vunpack.c.0.s8 %v262_v15  ;;  %vm460_vm4 = vsmask.f32 4368  ;;  %s3142_s16 = smov 48  }
   0x4   :  { %3002 = vmatprep.subr.bf16.mxu0 %v3094_v1  ;;  %3016 = vmatprep.mubr.bf16.mxu0 %v3101_v4  ;;  %v3100_v8 = vld [vmem:[%s4143_s1] sm:$0xff]   ;;  %v3102_v9 = vld [vmem:[%s4144_s0 + $0x8] sm:$0xff]   ;;  %v3104_v11 = vld [vmem:[%s4144_s0 + $0x18] sm:$0xff]   ;;  %4150 = vst [vmem:[#allocation2_spill] sm:$0xff] %v3218_v19  ;;  %vm462_vm6 = vsmask.f32 5396 }
   0x5   :  { %v3105_v12 = vld [vmem:[%s4144_s0 + $0x20] sm:$0xff]   ;;  %v3106_v13 = vld [vmem:[%s4144_s0 + $0x28] sm:$0xff]   ;;  %v3222_v24 = vsub.s32 %v263_v18, %v3218_v19  ;;  %vm455_vm5 = vmor %vm453_vm0, %vm454_vm1  ;;  %vm464_vm8 = vsmask.f32 6424  ;;  %vm466_vm10 = vsmask.f32 7452 }
   0x6   :  { %v3216_v17 = vld [vmem:[%s4145_s2] ss:$0 sm:$0xff]  ;;  %vm457_vm7 = vmor %vm455_vm5, %vm456_vm2  ;;  %s3140_s0 = smov 24   ;;  %s3143_s17 = smov 40   ;;  %vm3149_vm15 = vmmov 0   ;;  %vm2027_vm0 = vcmask 64512  }
   0x7   :  { %3003 = vmatpush3.bf16.msra.mxu0 %v3094_v1  ;;  %vm459_vm9 = vmor %vm457_vm7, %vm458_vm3  ;;  %s3144_s18 = smov 64   ;;  %s3145_s19 = smov 8   ;;  %vm2037_vm1 = vcmask 130048   ;;  %vm2044_vm2 = vcmask 195584   ;;  %vm2051_vm3 = vcmask 261120   ;;  %vm2065_vm5 = vcmask 392192  }
   0x8   :  { %3004 = vmatprep.subr.bf16.mxu0 %v3095_v2  ;;  %vm3417_vm11 = vmor %vm459_vm9, %vm460_vm4  ;;  %s3146_s20 = smov 32   ;;  %s3147_s21 = smov 56   ;;  %vm2058_vm4 = vcmask 326656   ;;  %vm2079_vm7 = vcmask 523264   ;;  %vm2440_vm9 = vcmask 1041409  }
   0x9   :  { %vm463_vm12 = vmor %vm3417_vm11, %vm462_vm6  ;;  %vm2072_vm6 = vcmask 457728  }
   0xa   :  { %vm465_vm13 = vmor %vm463_vm12, %vm464_vm8  ;;  %vm2086_vm8 = vcmask 588800  }
   0xb   :  { %3005 = vmatpush3.bf16.msra.mxu0 %v3095_v2  ;;  %vm3487_vm14 = vmor %vm465_vm13, %vm466_vm10  ;;  %vm2515_vm10 = vcmask 1040384  }
   0xc   :  { %3006 = vmatprep.subr.bf16.mxu0 %v3096_v3 }
   0xf   :  { %3007 = vmatpush3.bf16.msra.mxu0 %v3096_v3 }
  0x10   :  { %3008 = vmatprep.subr.bf16.mxu0 %v3097_v5 }
  0x13   :  { %3009 = vmatpush3.bf16.msra.mxu0 %v3097_v5 }
  0x14   :  { %3010 = vmatprep.subr.bf16.mxu0 %v3098_v6 }
  0x17   :  { %3011 = vmatpush3.bf16.msra.mxu0 %v3098_v6 }
  0x18   :  { %3012 = vmatprep.subr.bf16.mxu0 %v3099_v7 }
  0x1b   :  { %3013 = vmatpush3.bf16.msra.mxu0 %v3099_v7 }
  0x1c   :  { %3014 = vmatprep.subr.bf16.mxu0 %v3100_v8 }
  0x1f   :  { %3015 = vmatpush3.bf16.msra.mxu0 %v3100_v8 }
  0x22   :  { %3017 = vmatmul.mubr.bf16.vlgmr.msra.gmra.mxu0 %v3102_v9 }
  0x23   :  { %3020 = vmatprep.mubr.bf16.mxu0 %v3103_v10 }
  0x2a   :  { %3021 = vmatmul.mubr.bf16.gmra.mxu0 %v3104_v11 }
  0x2b   :  { %3024 = vmatprep.mubr.bf16.mxu0 %v3105_v12 }
  0x32   :  { %3025 = vmatmul.mubr.bf16.gmra.mxu0 %v3106_v13 }
  0xe2   :  { %v3018_v20 = vpop.f32.mrf.mxu0 }
  0xe3   :  { %v175_v21 = vadd.f32 %v3018_v20, %v3216_v17 }
  0xe4   :  { %v166_v22 = vpop.f32.mrf.mxu0 }
  0xe5   :  { %v215_v23 = vmax.f32 %v175_v21, 0.0  ;;  %v167_v25 = vadd.f32 %v3216_v17, %v166_v22 }
  0xe6   :  { %v3019_v26 = vpop.f32.mrf.mxu0 }
  0xe7   :  { %v2934_v27 = vpack.c.bf16 %v215_v23, %v215_v23  ;;  %v213_v28 = vmax.f32 %v167_v25, 0.0  ;;  %v178_v29 = vadd.f32 %v3019_v26, %v3216_v17 }
  0xe8   :  { %v169_v30 = vpop.f32.mrf.mxu0 }
  0xe9   :  { %v313_v31 = vrot.slane %v2934_v27, %v3222_v24  ;;  %v2932_v32 = vpack.c.bf16 %v213_v28, %v213_v28  ;;  %v216_v33 = vmax.f32 %v178_v29, 0.0  ;;  %v170_v34 = vadd.f32 %v3216_v17, %v169_v30 }
  0xea   :  { %v3022_v35 = vpop.f32.mrf.mxu0 }
  0xeb   :  { %v314_v36 = vcombine.high %v313_v31, %v313_v31  ;;  %v3229_v37 = vrot.slane %v313_v31, %v3222_v24  ;;  %v267_v38 = vrot.slane %v2932_v32, %v3222_v24  ;;  %v2935_v39 = vpack.c.bf16 %v216_v33, %v216_v33  ;;  %v3108_v33 = vld [vmem:[%s4143_s1 + $0x70] sm:$0xff]  }
  0xec   :  { %v214_v40 = vmax.f32 %v170_v34, 0.0  ;;  %v191_v41 = vadd.f32 %v3022_v35, %v3216_v17  ;;  %v182_v42 = vpop.f32.mrf.mxu0 }
  0xed   :  { %v268_v43 = vcombine.high %v267_v38, %v267_v38  ;;  %v3234_v44 = vrot.slane %v267_v38, %v3222_v24  ;;  %v336_v45 = vrot.slane %v2935_v39, %v3222_v24  ;;  %v183_v48 = vadd.f32 %v3216_v17, %v182_v42 }
  0xee   :  { %v2933_v46 = vpack.c.bf16 %v214_v40, %v214_v40  ;;  %v219_v47 = vmax.f32 %v191_v41, 0.0  ;;  %v3023_v49 = vpop.f32.mrf.mxu0  ;;  %v3239_v50 = vrot.slane %v314_v36, %v3222_v24  ;;  %v3243_v51 = vcombine.high %v3229_v37, %v3229_v37 }
  0xef   :  { %v3246_v52 = vrot.slane %v268_v43, %v3222_v24  ;;  %v194_v53 = vadd.f32 %v3023_v49, %v3216_v17  ;;  %v337_v54 = vcombine.high %v336_v45, %v336_v45  ;;  %v3250_v55 = vrot.slane %v336_v45, %v3222_v24 }
  0xf0   :  { %v290_v56 = vrot.slane %v2933_v46, %v3222_v24  ;;  %v2938_v57 = vpack.c.bf16 %v219_v47, %v219_v47  ;;  %v185_v58 = vpop.f32.mrf.mxu0  ;;  %v217_v60 = vmax.f32 %v183_v48, 0.0  ;;  %v3258_v63 = vcombine.high %v3234_v44, %v3234_v44 }
  0xf1   :  { %v220_v61 = vmax.f32 %v194_v53, 0.0  ;;  %v186_v62 = vadd.f32 %v3216_v17, %v185_v58  ;;  %v469_v0 = vshrl.u32 %v3234_v44, 16  ;;  %v3265_v4 = vrot.slane %v337_v54, %v3222_v24 }
  0xf2   :  { %v291_v1 = vcombine.high %v290_v56, %v290_v56  ;;  %v3262_v2 = vrot.slane %v290_v56, %v3222_v24  ;;  %v3026_v3 = vpop.f32.mrf.mxu0  ;;  %v359_v5 = vrot.slane %v2938_v57, %v3222_v24  ;;  %v2936_v6 = vpack.c.bf16 %v217_v60, %v217_v60 }
  0xf3   :  { %v2939_v7 = vpack.c.bf16 %v220_v61, %v220_v61  ;;  %v3270_v8 = vcombine.high %v3250_v55, %v3250_v55  ;;  %v218_v10 = vmax.f32 %v186_v62, 0.0  ;;  %v207_v11 = vadd.f32 %v3026_v3, %v3216_v17 }
  0xf4   :  { %v3273_v9 = vrot.slane %v291_v1, %v3222_v24  ;;  %v198_v12 = vpop.f32.mrf.mxu0  ;;  %v360_v13 = vcombine.high %v359_v5, %v359_v5  ;;  %v3277_v14 = vrot.slane %v359_v5, %v3222_v24  ;;  %v674_v15 = vrot.slane %v2936_v6, %v3222_v24 }
  0xf5   :  { %v382_v16 = vrot.slane %v2939_v7, %v3222_v24  ;;  %v2937_v18 = vpack.c.bf16 %v218_v10, %v218_v10  ;;  %v223_v20 = vmax.f32 %v207_v11, 0.0  ;;  %v199_v21 = vadd.f32 %v3216_v17, %v198_v12 }
  0xf6   :  { %v3027_v22 = vpop.f32.mrf.mxu0  ;;  %v3284_v23 = vcombine.high %v3262_v2, %v3262_v2  ;;  %v3287_v25 = vrot.slane %v360_v13, %v3222_v24  ;;  %v3291_v26 = vcombine.high %v3277_v14, %v3277_v14  ;;  %v675_v27 = vcombine.high %v674_v15, %v674_v15 }
  0xf7   :  { %v1167_v28 = vcombine.low %v3239_v50, %v3243_v51  ;;  %v3296_v29 = vrot.slane %v674_v15, %v3222_v24  ;;  %v383_v30 = vcombine.high %v382_v16, %v382_v16  ;;  %v3299_v31 = vrot.slane %v382_v16, %v3222_v24 }
  0xf8   :  { %v772_v32 = vrot.slane %v2937_v18, %v3222_v24  ;;  %v2942_v35 = vpack.c.bf16 %v223_v20, %v223_v20  ;;  %v221_v36 = vmax.f32 %v199_v21, 0.0  ;;  %v201_v38 = vpop.f32.mrf.mxu0  ;;  %v3306_v39 = vrot.slane %v675_v27, %v3222_v24 }
  0xf9   :  { %v3310_v40 = vcombine.high %v3296_v29, %v3296_v29  ;;  %v3313_v41 = vrot.slane %v383_v30, %v3222_v24  ;;  %v3317_v43 = vcombine.high %v3299_v31, %v3299_v31  ;;  %v210_v49 = vadd.f32 %v3027_v22, %v3216_v17 }
  0xfa   :  { %v773_v42 = vcombine.high %v772_v32, %v772_v32  ;;  %v3320_v45 = vrot.slane %v772_v32, %v3222_v24  ;;  %v697_v46 = vrot.slane %v2942_v35, %v3222_v24  ;;  %v2940_v47 = vpack.c.bf16 %v221_v36, %v221_v36 }
  0xfb   :  { %v202_v53 = vadd.f32 %v3216_v17, %v201_v38  ;;  %v3329_v54 = vrot.slane %v1167_v28, %v3222_v24  ;;  %v224_v62 = vmax.f32 %v210_v49, 0.0  ;;  %v1317_v17 = vcombine.low %v3262_v2, %v3273_v9 }
  0xfc   :  { %v3324_v48 = vrot.slane %v773_v42, %v3222_v24  ;;  %v3333_v56 = vcombine.high %v3320_v45, %v3320_v45  ;;  %v698_v58 = vcombine.high %v697_v46, %v697_v46  ;;  %v3337_v60 = vrot.slane %v697_v46, %v3222_v24 }
  0xfd   :  { %v405_v61 = vrot.slane %v2940_v47, %v3222_v24  ;;  %v222_v1 = vmax.f32 %v202_v53, 0.0  ;;  %v1318_v6 = vcombine.low %v3284_v23, %v3229_v37  ;;  %v1319_v7 = vcombine.low %v3250_v55, %v3265_v4 }
  0xfe   :  { %v3343_v3 = vrot.slane %v698_v58, %v3222_v24  ;;  %v3347_v5 = vcombine.high %v3337_v60, %v3337_v60  ;;  %v2943_v12 = vpack.c.bf16 %v224_v62, %v224_v62  ;;  %v1326_v15 = vrot.slane %v1317_v17, %v3222_v24 }
  0xff   :  { %v406_v10 = vcombine.high %v405_v61, %v405_v61  ;;  %v3356_v11 = vrot.slane %v405_v61, %v3222_v24  ;;  %v2941_v13 = vpack.c.bf16 %v222_v1, %v222_v1  ;;  %v1333_v16 = vrot.slane %v1318_v6, %v3222_v24 }
 0x100   :  { %v1340_v18 = vrot.slane %v1319_v7, %v3222_v24  ;;  %v3363_v20 = vcombine.high %v3246_v52, %v3246_v52  ;;  %v795_v27 = vrot.slane %v2943_v12, %v3222_v24  ;;  %v1164_v35 = vcombine.low %v3246_v52, %v3258_v63 }
 0x101   :  { %v3366_v21 = vrot.slane %v406_v10, %v3222_v24  ;;  %v3370_v22 = vcombine.high %v3356_v11, %v3356_v11  ;;  %v428_v28 = vrot.slane %v2941_v13, %v3222_v24  ;;  %v1341_v30 = vcombine.low %v1326_v15, %v1333_v16 }
 0x102   :  { %v1342_v32 = vcombine.low %v3329_v54, %v1340_v18  ;;  %v1165_v36 = vcombine.low %v3363_v20, %v3273_v9  ;;  %v796_v38 = vcombine.high %v795_v27, %v795_v27  ;;  %v3381_v42 = vrot.slane %v795_v27, %v3222_v24 }
 0x103   :  { %v429_v46 = vcombine.high %v428_v28, %v428_v28  ;;  %v3384_v47 = vrot.slane %v428_v28, %v3222_v24  ;;  %v1349_v49 = vrot.slane %v1341_v30, %v3222_v24  ;;  %v2870_v58 = vcombine.high %v3262_v2, %v3273_v9 }
 0x104   :  { %v1356_v53 = vrot.slane %v1342_v32, %v3222_v24  ;;  %v1174_v61 = vrot.slane %v1164_v35, %v3222_v24  ;;  %v3393_v62 = vrot.slane %v796_v38, %v3222_v24  ;;  %v3397_v1 = vcombine.high %v3381_v42, %v3381_v42 }
 0x105   :  { %v3401_v6 = vrot.slane %v429_v46, %v3222_v24  ;;  %v3405_v7 = vcombine.high %v3384_v47, %v3384_v47  ;;  %v1181_v12 = vrot.slane %v1165_v36, %v3222_v24  ;;  %v1188_v13 = vrot.slane %v2870_v58, %v3222_v24 }
 0x106   :  { %v1357_v10 = vcombine.low %v1349_v49, %v1356_v53  ;;  %v867_v16 = vcombine.low %v3229_v37, %v3239_v50  ;;  %v913_v18 = vcombine.low %v3243_v51, %v3250_v55  ;;  %v914_v27 = vcombine.low %v3265_v4, %v3270_v8 }
 0x107   :  { %v1196_v30 = vcombine.low %v1174_v61, %v1181_v12  ;;  %v1197_v32 = vcombine.low %v1188_v13, %v3329_v54  ;;  %v1728_v35 = vcombine.low %v3296_v29, %v3306_v39  ;;  %v3427_v36 = vcombine.high %v3273_v9, %v3273_v9 }
 0x108   :  { %1448 = vrot.lane.b32.xlu1 %v1357_v10, %s3140_s0  ;;  %v3430_v38 = vrot.slane %v867_v16, %v3222_v24  ;;  %v3433_v46 = vrot.slane %v913_v18, %v3222_v24  ;;  %v3436_v49 = vrot.slane %v914_v27, %v3222_v24  ;;  %v866_v53 = vcombine.low %v3273_v9, %v3284_v23 }
 0x109   :  { %v1204_v58 = vrot.slane %v1196_v30, %v3222_v24  ;;  %v1211_v61 = vrot.slane %v1197_v32, %v3222_v24  ;;  %v1735_v10 = vrot.slane %v1728_v35, %v3222_v24  ;;  %v515_v12 = vshll.u32 %v3427_v36, 16 }
 0x10a   :  { %4153 = vst [vmem:[#allocation3_spill] sm:$0xff] %v3433_v46  ;;  %v1736_v13 = vcombine.low %v3430_v38, %v3433_v46  ;;  %v3450_v16 = vrot.slane %v866_v53, %v3222_v24  ;;  %v1607_v18 = vcombine.low %v3427_v36, %v3239_v50  ;;  %v2874_v27 = vcombine.high %v3229_v37, %v3239_v50 }
 0x10b   :  { %v1212_v30 = vcombine.low %v1204_v58, %v1211_v61  ;;  %v1737_v32 = vcombine.low %v3436_v49, %v1735_v10  ;;  %v3459_v35 = vcombine.high %v3239_v50, %v3239_v50  ;;  %v2871_v28 = vcombine.high %v3250_v55, %v3265_v4 }
 0x10c   :  { %v1744_v34 = vrot.slane %v1736_v13, %v3222_v24  ;;  %v1615_v53 = vrot.slane %v1607_v18, %v3222_v24  ;;  %v1622_v59 = vrot.slane %v2874_v27, %v3222_v24  ;;  %v1359_v36 = vcombine.low %v3306_v39, %v3310_v40 }
 0x10d   :  { %1311 = vrot.lane.b32.xlu0 %v1212_v30, %s3141_s15  ;;  %v1751_v58 = vrot.slane %v1737_v32, %v3222_v24  ;;  %v540_v61 = vshll.u32 %v3459_v35, 16  ;;  %v1213_v10 = vcombine.low %v3459_v35, %v3265_v4  ;;  %v3475_v13 = vrot.slane %v2871_v28, %v3222_v24 }
 0x10e   :  { %v1623_v18 = vcombine.low %v3450_v16, %v1615_v53  ;;  %v1624_v27 = vcombine.low %v1622_v59, %v3436_v49  ;;  %v3480_v17 = vrot.slane %v1359_v36, %v3222_v24  ;;  %v474_v57 = vshll.u32 %v3246_v52, 16 }
 0x10f   :  { %v1752_v30 = vcombine.low %v1744_v34, %v1751_v58  ;;  %v3484_v32 = vrot.slane %v1213_v10, %v3222_v24  ;;  %v477_v35 = vshrl.u32 %v3246_v52, 16  ;;  %v482_v28 = vshll.u32 %v3258_v63, 16 }
 0x110   :  { %v1631_v59 = vrot.slane %v1623_v18, %v3222_v24  ;;  %v1638_v53 = vrot.slane %v1624_v27, %v3222_v24  ;;  %v1939_v36 = vcombine.low %v3475_v13, %v3480_v17  ;;  %v476_v34 = vsel %vm3487_vm14, %v469_v0, %v474_v57 }
 0x111   :  { %1827 = vrot.lane.b32.xlu1 %v1752_v30, %s3142_s16  ;;  %v1938_v58 = vcombine.low %v3329_v54, %v3484_v32  ;;  %v484_v10 = vsel %vm3487_vm14, %v477_v35, %v482_v28  ;;  %v485_v18 = vshrl.u32 %v3258_v63, 16  ;;  %v494_v27 = vshrl.u32 %v3262_v2, 16 }
 0x112   :  { %v1639_v15 = vcombine.low %v1631_v59, %v1638_v53  ;;  %v1953_v19 = vrot.slane %v1939_v36, %v3222_v24  ;;  %v499_v46 = vshll.u32 %v3273_v9, 16  ;;  %v502_v0 = vshrl.u32 %v3273_v9, 16 }
 0x113   :  { %v1946_v57 = vrot.slane %v1938_v58, %v3222_v24  ;;  %v4156_v30 = vshll.u32 %v3363_v20, 16  ;;  %v507_v35 = vshll.u32 %v3284_v23, 16  ;;  %v510_v28 = vshrl.u32 %v3284_v23, 16 }
 0x114   :  { %1722 = vrot.lane.b32.xlu0 %v1639_v15, %s3143_s17  ;;  %v501_v59 = vsel %vm3487_vm14, %v494_v27, %v499_v46  ;;  %v519_v53 = vshrl.u32 %v3229_v37, 16  ;;  %v524_v9 = vshll.u32 %v3239_v50, 16  ;;  %v527_v36 = vshrl.u32 %v3239_v50, 16 }
 0x115   :  { %v492_v54 = vsel %vm3487_vm14, %v485_v18, %v4156_v30  ;;  %v1954_v20 = vcombine.low %v1946_v57, %v1953_v19  ;;  %v509_v58 = vsel %vm3487_vm14, %v502_v0, %v507_v35  ;;  %v517_v18 = vsel %vm3487_vm14, %v510_v28, %v515_v12 }
 0x116   :  { %v532_v23 = vshll.u32 %v3243_v51, 16  ;;  %v526_v15 = vsel %vm3487_vm14, %v519_v53, %v524_v9  ;;  %v1011_v30 = vcombine.low %v476_v34, %v484_v10  ;;  %v1012_v46 = vcombine.low %v492_v54, %v501_v59 }
 0x117   :  { %v1013_v27 = vcombine.low %v509_v58, %v517_v18  ;;  %2021 = vrot.lane.b32.xlu1 %v1954_v20, %s3144_s18  ;;  %v535_v37 = vshrl.u32 %v3243_v51, 16  ;;  %v544_v50 = vshrl.u32 %v3250_v55, 16  ;;  %v549_v12 = vshll.u32 %v3265_v4, 16 }
 0x118   :  { %v534_v19 = vsel %vm3487_vm14, %v527_v36, %v532_v23  ;;  %v1021_v57 = vrot.slane %v1011_v30, %v3222_v24  ;;  %v1028_v35 = vrot.slane %v1012_v46, %v3222_v24  ;;  %v552_v28 = vshrl.u32 %v3265_v4, 16 }
 0x119   :  { %v1014_v0 = vcombine.low %v526_v15, %v534_v19  ;;  %v1035_v34 = vrot.slane %v1013_v27, %v3222_v24  ;;  %v542_v10 = vsel %vm3487_vm14, %v535_v37, %v540_v61  ;;  %v551_v54 = vsel %vm3487_vm14, %v544_v50, %v549_v12 }
 0x11a   :  { %v557_v51 = vshll.u32 %v3270_v8, 16  ;;  %v1043_v53 = vcombine.low %v1021_v57, %v1028_v35  ;;  %v1454_v9 = vcombine.low %v501_v59, %v509_v58  ;;  %v1455_v36 = vcombine.low %v517_v18, %v526_v15 }
 0x11b   :  { %v1042_v55 = vrot.slane %v1014_v0, %v3222_v24  ;;  %v1456_v23 = vcombine.low %v534_v19, %v542_v10  ;;  %v3551_v30 = vcombine.high %v3265_v4, %v3265_v4  ;;  %v560_v61 = vshrl.u32 %v3270_v8, 16 }
 0x11c   :  { %v559_v20 = vsel %vm3487_vm14, %v552_v28, %v557_v51  ;;  %v1051_v27 = vrot.slane %v1043_v53, %v3222_v24  ;;  %v1464_v50 = vrot.slane %v1454_v9, %v3222_v24  ;;  %v1471_v12 = vrot.slane %v1455_v36, %v3222_v24 }
 0x11d   :  { %v1044_v46 = vcombine.low %v1035_v34, %v1042_v55  ;;  %v1457_v37 = vcombine.low %v551_v54, %v559_v20  ;;  %v1478_v59 = vrot.slane %v1456_v23, %v3222_v24  ;;  %v565_v58 = vshll.u32 %v3551_v30, 16 }
 0x11e   :  { %v717_v18 = vshrl.u32 %v3296_v29, 16  ;;  %v722_v19 = vshll.u32 %v3306_v39, 16  ;;  %v725_v0 = vshrl.u32 %v3306_v39, 16  ;;  %v1486_v57 = vcombine.low %v1464_v50, %v1471_v12 }
 0x11f   :  { %v1058_v15 = vrot.slane %v1044_v46, %v3222_v24  ;;  %v1485_v4 = vrot.slane %v1457_v37, %v3222_v24  ;;  %v3566_v35 = vsel %vm3487_vm14, %v560_v61, %v565_v58  ;;  %v730_v34 = vshll.u32 %v3310_v40, 16 }
 0x120   :  { %v1060_v28 = vcombine.low %v542_v10, %v551_v54  ;;  %v3571_v9 = vsel %vm3487_vm14, %v717_v18, %v722_v19  ;;  %v1061_v36 = vcombine.low %v559_v20, %v3566_v35  ;;  %v1494_v23 = vrot.slane %v1486_v57, %v3222_v24 }
 0x121   :  { %v1059_v51 = vcombine.low %v1051_v27, %v1058_v15  ;;  %v1487_v53 = vcombine.low %v1478_v59, %v1485_v4  ;;  %v3577_v46 = vsel %vm3487_vm14, %v725_v0, %v730_v34  ;;  %v449_v37 = vcombine.high %v3287_v25, %v3287_v25 }
 0x122   :  { %v1070_v61 = vrot.slane %v1060_v28, %v3222_v24  ;;  %v1077_v54 = vrot.slane %v1061_v36, %v3222_v24  ;;  %v1833_v20 = vcombine.low %v3571_v9, %v3577_v46  ;;  %v1215_v27 = vcombine.low %v3287_v25, %v3291_v26 }
 0x123   :  { %1158 = vrot.lane.b32.xlu0 %v1059_v51, %s3145_s19  ;;  %v1501_v10 = vrot.slane %v1487_v53, %v3222_v24  ;;  %v590_v12 = vshll.u32 %v449_v37, 16  ;;  %v1216_v59 = vcombine.low %v449_v37, %v3313_v41  ;;  %v1245_v58 = vcombine.low %v3484_v32, %v3475_v13 }
 0x124   :  { %v1841_v50 = vcombine.low %v1042_v55, %v1070_v61  ;;  %v1840_v15 = vrot.slane %v1833_v20, %v3222_v24  ;;  %v1237_v4 = vrot.slane %v1215_v27, %v3222_v24  ;;  %v574_v19 = vshll.u32 %v3287_v25, 16 }
 0x125   :  { %v1502_v18 = vcombine.low %v1494_v23, %v1501_v10  ;;  %v1244_v57 = vrot.slane %v1216_v59, %v3222_v24  ;;  %v1253_v34 = vrot.slane %v1245_v58, %v3222_v24  ;;  %v577_v55 = vshrl.u32 %v3287_v25, 16 }
 0x126   :  { %v1849_v0 = vrot.slane %v1841_v50, %v3222_v24  ;;  %v1842_v28 = vcombine.low %v1077_v54, %v1840_v15  ;;  %v4157_v13 = vshrl.u32 %v3277_v14, 16  ;;  %v582_v51 = vshll.u32 %v3291_v26, 16 }
 0x127   :  { %1601 = vrot.lane.b32.xlu1 %v1502_v18, %s3146_s20  ;;  %v585_v53 = vshrl.u32 %v3291_v26, 16  ;;  %v1246_v36 = vcombine.low %v1237_v4, %v1244_v57  ;;  %v594_v23 = vshrl.u32 %v3299_v31, 16  ;;  %v599_v37 = vshll.u32 %v3313_v41, 16 }
 0x128   :  { %v576_v32 = vsel %vm3487_vm14, %v4157_v13, %v574_v19  ;;  %v1092_v10 = vcombine.low %v1070_v61, %v1077_v54  ;;  %v1856_v20 = vrot.slane %v1842_v28, %v3222_v24  ;;  %v584_v27 = vsel %vm3487_vm14, %v577_v55, %v582_v51 }
 0x129   :  { %v592_v50 = vsel %vm3487_vm14, %v585_v53, %v590_v12  ;;  %v963_v59 = vcombine.low %v3356_v11, %v3366_v21  ;;  %v1260_v58 = vrot.slane %v1246_v36, %v3222_v24  ;;  %v601_v18 = vsel %vm3487_vm14, %v594_v23, %v599_v37 }
 0x12a   :  { %v1062_v15 = vcombine.low %v576_v32, %v584_v27  ;;  %v1100_v4 = vrot.slane %v1092_v10, %v3222_v24  ;;  %v1857_v61 = vcombine.low %v1849_v0, %v1856_v20  ;;  %v1063_v54 = vcombine.low %v592_v50, %v601_v18 }
 0x12b   :  { %v964_v19 = vcombine.low %v3370_v22, %v3384_v47  ;;  %v3622_v57 = vrot.slane %v963_v59, %v3222_v24  ;;  %v1261_v12 = vcombine.low %v1253_v34, %v1260_v58  ;;  %v1753_v28 = vcombine.low %v3310_v40, %v3320_v45 }
 0x12c   :  { %v1084_v55 = vrot.slane %v1062_v15, %v3222_v24  ;;  %v1754_v13 = vcombine.low %v3324_v48, %v3333_v56  ;;  %1932 = vrot.lane.b32.xlu0 %v1857_v61, %s3147_s21  ;;  %v1091_v0 = vrot.slane %v1063_v54, %v3222_v24  ;;  %v1358_v51 = vcombine.low %v3270_v8, %v3296_v29 }
 0x12d   :  { %v3632_v32 = vrot.slane %v964_v19, %v3222_v24  ;;  %v1360_v34 = vcombine.low %v3299_v31, %v3313_v41  ;;  %1313 = vrot.lane.b32.xlu1 %v1261_v12, %s3141_s15  ;;  %v1761_v53 = vrot.slane %v1753_v28, %v3222_v24  ;;  %v1361_v23 = vcombine.low %v3317_v43, %v3356_v11 }
 0x12e   :  { %v1768_v36 = vrot.slane %v1754_v13, %v3222_v24  ;;  %v450_v37 = vcombine.high %v3313_v41, %v3313_v41  ;;  %v1093_v10 = vcombine.low %v1084_v55, %v1091_v0  ;;  %v1368_v8 = vrot.slane %v1358_v51, %v3222_v24 }
 0x12f   :  { %v1770_v20 = vcombine.low %v3622_v57, %v3632_v32  ;;  %v1382_v27 = vrot.slane %v1360_v34, %v3222_v24  ;;  %v1389_v59 = vrot.slane %v1361_v23, %v3222_v24  ;;  %v602_v58 = vshrl.u32 %v3313_v41, 16 }
 0x130   :  { %v1769_v50 = vcombine.low %v1761_v53, %v1768_v36  ;;  %v607_v15 = vshll.u32 %v3317_v43, 16  ;;  %v1107_v61 = vrot.slane %v1093_v10, %v3222_v24  ;;  %v1390_v19 = vcombine.low %v1368_v8, %v3480_v17 }
 0x131   :  { %v1784_v54 = vrot.slane %v1770_v20, %v3222_v24  ;;  %v610_v12 = vshrl.u32 %v3317_v43, 16  ;;  %v1391_v28 = vcombine.low %v1382_v27, %v1389_v59  ;;  %v615_v0 = vshll.u32 %v450_v37, 16 }
 0x132   :  { %v1777_v55 = vrot.slane %v1769_v50, %v3222_v24  ;;  %v3659_v13 = vsel %vm3487_vm14, %v602_v58, %v607_v15  ;;  %v1108_v51 = vcombine.low %v1100_v4, %v1107_v61  ;;  %v1398_v34 = vrot.slane %v1390_v19, %v3222_v24 }
 0x133   :  { %v619_v53 = vshrl.u32 %v3356_v11, 16  ;;  %v624_v36 = vshll.u32 %v3366_v21, 16  ;;  %v1405_v17 = vrot.slane %v1391_v28, %v3222_v24  ;;  %v3667_v10 = vsel %vm3487_vm14, %v610_v12, %v615_v0 }
 0x134   :  { %v1785_v23 = vcombine.low %v1777_v55, %v1784_v54  ;;  %v714_v20 = vcombine.high %v3306_v39, %v3306_v39  ;;  %1160 = vrot.lane.b32.xlu0 %v1108_v51, %s3145_s19  ;;  %v733_v8 = vshrl.u32 %v3310_v40, 16  ;;  %v1503_v27 = vcombine.low %v3566_v35, %v3571_v9 }
 0x135   :  { %v3674_v4 = vsel %vm3487_vm14, %v619_v53, %v624_v36  ;;  %v1505_v50 = vcombine.low %v601_v18, %v3659_v13  ;;  %v1406_v59 = vcombine.low %v1398_v34, %v1405_v17  ;;  %v962_v61 = vcombine.low %v3313_v41, %v3317_v43 }
 0x136   :  { %1829 = vrot.lane.b32.xlu1 %v1785_v23, %s3142_s16  ;;  %v738_v58 = vshll.u32 %v714_v20, 16  ;;  %v1506_v15 = vcombine.low %v3667_v10, %v3674_v4  ;;  %v1513_v54 = vrot.slane %v1503_v27, %v3222_v24  ;;  %v1640_v40 = vcombine.low %v3551_v30, %v3306_v39 }
 0x137   :  { %v1527_v19 = vrot.slane %v1505_v50, %v3222_v24  ;;  %v2875_v35 = vcombine.high %v3296_v29, %v3306_v39  ;;  %v3697_v12 = vrot.slane %v962_v61, %v3222_v24  ;;  %v1642_v43 = vcombine.low %v450_v37, %v3366_v21 }
 0x138   :  { %v3693_v9 = vsel %vm3487_vm14, %v733_v8, %v738_v58  ;;  %v1534_v18 = vrot.slane %v1506_v15, %v3222_v24  ;;  %1450 = vrot.lane.b32.xlu0 %v1406_v59, %s3140_s0  ;;  %v1649_v30 = vrot.slane %v1640_v40, %v3222_v24  ;;  %v451_v39 = vcombine.high %v3366_v21, %v3366_v21 }
 0x139   :  { %v1504_v55 = vcombine.low %v3577_v46, %v3693_v9  ;;  %v1656_v29 = vrot.slane %v2875_v35, %v3222_v24  ;;  %v1663_v0 = vrot.slane %v1642_v43, %v3222_v24  ;;  %v1263_v51 = vcombine.low %v3366_v21, %v3370_v22 }
 0x13a   :  { %v1536_v28 = vcombine.low %v1527_v19, %v1534_v18  ;;  %v1955_v37 = vcombine.low %v714_v20, %v3324_v48  ;;  %v640_v36 = vshll.u32 %v451_v39, 16  ;;  %v1264_v46 = vcombine.low %v451_v39, %v3401_v6 }
 0x13b   :  { %v1520_v34 = vrot.slane %v1504_v55, %v3222_v24  ;;  %v1664_v53 = vcombine.low %v1649_v30, %v1656_v29  ;;  %v1665_v17 = vcombine.low %v3697_v12, %v1663_v0  ;;  %v1279_v8 = vrot.slane %v1263_v51, %v3222_v24 }
 0x13c   :  { %v1550_v23 = vrot.slane %v1536_v28, %v3222_v24  ;;  %v2878_v27 = vcombine.high %v3320_v45, %v3324_v48  ;;  %v1286_v20 = vrot.slane %v1264_v46, %v3222_v24  ;;  %v1963_v58 = vrot.slane %v1955_v37, %v3222_v24 }
 0x13d   :  { %v1535_v50 = vcombine.low %v1513_v54, %v1520_v34  ;;  %v1672_v59 = vrot.slane %v1664_v53, %v3222_v24  ;;  %v1679_v15 = vrot.slane %v1665_v17, %v3222_v24  ;;  %v1407_v19 = vcombine.low %v3384_v47, %v3401_v6 }
 0x13e   :  { %v1970_v61 = vrot.slane %v2878_v27, %v3222_v24  ;;  %v1408_v40 = vcombine.low %v3405_v7, %v3337_v60  ;;  %v1972_v18 = vcombine.low %v1279_v8, %v1286_v20  ;;  %v1409_v54 = vcombine.low %v3343_v3, %v3347_v5 }
 0x13f   :  { %v1543_v35 = vrot.slane %v1535_v50, %v3222_v24  ;;  %v2872_v43 = vcombine.high %v3299_v31, %v3313_v41  ;;  %v1680_v55 = vcombine.low %v1672_v59, %v1679_v15  ;;  %v1416_v29 = vrot.slane %v1407_v19, %v3222_v24 }
 0x140   :  { %v1971_v30 = vcombine.low %v1963_v58, %v1970_v61  ;;  %v1423_v39 = vrot.slane %v1408_v40, %v3222_v24  ;;  %v1986_v0 = vrot.slane %v1972_v18, %v3222_v24  ;;  %v3736_v51 = vrot.slane %v1409_v54, %v3222_v24 }
 0x141   :  { %v1551_v28 = vcombine.low %v1543_v35, %v1550_v23  ;;  %v2873_v37 = vcombine.high %v3384_v47, %v3401_v6  ;;  %1724 = vrot.lane.b32.xlu0 %v1680_v55, %s3143_s17  ;;  %v1431_v41 = vcombine.low %v1279_v8, %v1416_v29  ;;  %v1272_v53 = vrot.slane %v2872_v43, %v3222_v24 }
 0x142   :  { %v1979_v34 = vrot.slane %v1971_v30, %v3222_v24  ;;  %v627_v46 = vshrl.u32 %v3366_v21, 16  ;;  %v1432_v23 = vcombine.low %v1423_v39, %v3736_v51  ;;  %v632_v27 = vshll.u32 %v3370_v22, 16 }
 0x143   :  { %1603 = vrot.lane.b32.xlu1 %v1551_v28, %s3146_s20  ;;  %v3747_v17 = vrot.slane %v2873_v37, %v3222_v24  ;;  %v635_v50 = vshrl.u32 %v3370_v22, 16  ;;  %v1439_v58 = vrot.slane %v1431_v41, %v3222_v24  ;;  %v1294_v15 = vcombine.low %v1272_v53, %v1279_v8 }
 0x144   :  { %v1987_v59 = vcombine.low %v1979_v34, %v1986_v0  ;;  %v644_v61 = vshrl.u32 %v3384_v47, 16  ;;  %v1446_v19 = vrot.slane %v1432_v23, %v3222_v24  ;;  %v3757_v35 = vsel %vm3487_vm14, %v627_v46, %v632_v27 }
 0x145   :  { %v1295_v40 = vcombine.low %v1286_v20, %v3747_v17  ;;  %v3761_v18 = vsel %vm3487_vm14, %v635_v50, %v640_v36  ;;  %v1302_v22 = vrot.slane %v1294_v15, %v3222_v24  ;;  %v649_v54 = vshll.u32 %v3401_v6, 16 }
 0x146   :  { %v812_v8 = vcombine.high %v3324_v48, %v3324_v48  ;;  %v820_v47 = vshll.u32 %v3324_v48, 16  ;;  %v1447_v20 = vcombine.low %v1439_v58, %v1446_v19  ;;  %v823_v55 = vshrl.u32 %v3324_v48, 16 }
 0x147   :  { %2023 = vrot.lane.b32.xlu1 %v1987_v59, %s3144_s18  ;;  %v1309_v43 = vrot.slane %v1295_v40, %v3222_v24  ;;  %v828_v30 = vshll.u32 %v3333_v56, 16  ;;  %v3774_v36 = vsel %vm3487_vm14, %v644_v61, %v649_v54  ;;  %v4158_v29 = vshrl.u32 %v3320_v45, 16 }
 0x148   :  { %v831_v28 = vshrl.u32 %v3333_v56, 16  ;;  %v836_v0 = vshll.u32 %v812_v8, 16  ;;  %1452 = vrot.lane.b32.xlu0 %v1447_v20, %s3140_s0  ;;  %v1110_v34 = vcombine.low %v3674_v4, %v3757_v35  ;;  %v1111_v41 = vcombine.low %v3761_v18, %v3774_v36 }
 0x149   :  { %v822_v39 = vsel %vm3487_vm14, %v4158_v29, %v820_v47  ;;  %v1310_v37 = vcombine.low %v1302_v22, %v1309_v43  ;;  %v830_v48 = vsel %vm3487_vm14, %v823_v55, %v828_v30  ;;  %v965_v56 = vcombine.low %v3401_v6, %v3405_v7 }
 0x14a   :  { %v838_v45 = vsel %vm3487_vm14, %v831_v28, %v836_v0  ;;  %v1858_v53 = vcombine.low %v3693_v9, %v822_v39  ;;  %v1786_v46 = vcombine.low %v3337_v60, %v3343_v3  ;;  %v1126_v23 = vrot.slane %v1110_v34, %v3222_v24 }
 0x14b   :  { %1315 = vrot.lane.b32.xlu1 %v1310_v37, %s3141_s15  ;;  %v1133_v4 = vrot.slane %v1111_v41, %v3222_v24  ;;  %v1859_v27 = vcombine.low %v830_v48, %v838_v45  ;;  %v1787_v50 = vcombine.low %v3347_v5, %v3381_v42  ;;  %v3802_v9 = vrot.slane %v965_v56, %v3222_v24 }
 0x14c   :  { %v1866_v59 = vrot.slane %v1858_v53, %v3222_v24  ;;  %v1788_v58 = vcombine.low %v3393_v62, %v3397_v1  ;;  %v1795_v15 = vrot.slane %v1786_v46, %v3222_v24  ;;  %v452_v22 = vcombine.high %v3401_v6, %v3401_v6 }
 0x14d   :  { %v1873_v61 = vrot.slane %v1859_v27, %v3222_v24  ;;  %v1875_v19 = vcombine.low %v1126_v23, %v1133_v4  ;;  %v1802_v40 = vrot.slane %v1787_v50, %v3222_v24  ;;  %v652_v47 = vshrl.u32 %v3401_v6, 16 }
 0x14e   :  { %v1809_v54 = vrot.slane %v1788_v58, %v3222_v24  ;;  %v1810_v8 = vcombine.low %v3802_v9, %v1795_v15  ;;  %v657_v20 = vshll.u32 %v3405_v7, 16  ;;  %v660_v30 = vshrl.u32 %v3405_v7, 16 }
 0x14f   :  { %v1874_v43 = vcombine.low %v1866_v59, %v1873_v61  ;;  %v1889_v55 = vrot.slane %v1875_v19, %v3222_v24  ;;  %v665_v29 = vshll.u32 %v452_v22, 16  ;;  %v1109_v37 = vcombine.low %v3659_v13, %v3667_v10 }
 0x150   :  { %v1811_v39 = vcombine.low %v1802_v40, %v1809_v54  ;;  %v1818_v28 = vrot.slane %v1810_v8, %v3222_v24  ;;  %v659_v0 = vsel %vm3487_vm14, %v652_v47, %v657_v20  ;;  %v715_v34 = vcombine.high %v3343_v3, %v3343_v3 }
 0x151   :  { %v1882_v48 = vrot.slane %v1874_v43, %v3222_v24  ;;  %v667_v6 = vsel %vm3487_vm14, %v660_v30, %v665_v29  ;;  %v742_v7 = vshrl.u32 %v3337_v60, 16  ;;  %v1119_v53 = vrot.slane %v1109_v37, %v3222_v24 }
 0x152   :  { %v1825_v41 = vrot.slane %v1811_v39, %v3222_v24  ;;  %v1112_v45 = vcombine.low %v659_v0, %v667_v6  ;;  %v747_v56 = vshll.u32 %v3343_v3, 16  ;;  %v750_v13 = vshrl.u32 %v3343_v3, 16 }
 0x153   :  { %v1890_v46 = vcombine.low %v1882_v48, %v1889_v55  ;;  %v755_v10 = vshll.u32 %v3347_v5, 16  ;;  %v758_v27 = vshrl.u32 %v3347_v5, 16  ;;  %v1141_v58 = vcombine.low %v1119_v53, %v1126_v23 }
 0x154   :  { %v1826_v50 = vcombine.low %v1818_v28, %v1825_v41  ;;  %v3835_v59 = vrot.slane %v1112_v45, %v3222_v24  ;;  %v749_v15 = vsel %vm3487_vm14, %v742_v7, %v747_v56  ;;  %v763_v19 = vshll.u32 %v715_v34, 16 }
 0x155   :  { %1934 = vrot.lane.b32.xlu0 %v1890_v46, %s3147_s21  ;;  %v757_v61 = vsel %vm3487_vm14, %v750_v13, %v755_v10  ;;  %v1552_v40 = vcombine.low %v3757_v35, %v3761_v18  ;;  %v1553_v54 = vcombine.low %v3774_v36, %v659_v0  ;;  %v1149_v23 = vrot.slane %v1141_v58, %v3222_v24 }
 0x156   :  { %1831 = vrot.lane.b32.xlu1 %v1826_v50, %s3142_s16  ;;  %v1142_v5 = vcombine.low %v1133_v4, %v3835_v59  ;;  %v1554_v8 = vcombine.low %v667_v6, %v749_v15  ;;  %v2876_v47 = vcombine.high %v3356_v11, %v3366_v21  ;;  %v765_v20 = vsel %vm3487_vm14, %v758_v27, %v763_v19 }
 0x157   :  { %v1562_v43 = vrot.slane %v1552_v40, %v3222_v24  ;;  %v1569_v55 = vrot.slane %v1553_v54, %v3222_v24  ;;  %v1682_v35 = vcombine.low %v452_v22, %v3343_v3  ;;  %v1555_v36 = vcombine.low %v757_v61, %v765_v20 }
 0x158   :  { %v1156_v18 = vrot.slane %v1142_v5, %v3222_v24  ;;  %v1576_v4 = vrot.slane %v1554_v8, %v3222_v24  ;;  %v2877_v30 = vcombine.high %v3337_v60, %v3343_v3  ;;  %v1690_v11 = vrot.slane %v2876_v47, %v3222_v24  ;;  %v3107_v47 = vld [vmem:[%s4143_s1 + $0x78] sm:$0xff]  }
 0x159   :  { %v1584_v29 = vcombine.low %v1562_v43, %v1569_v55  ;;  %v1697_v21 = vrot.slane %v1682_v35, %v3222_v24  ;;  %v1988_v39 = vcombine.low %v715_v34, %v3393_v62  ;;  %v1583_v0 = vrot.slane %v1555_v36, %v3222_v24 }
 0x15a   :  { %v1157_v28 = vcombine.low %v1149_v23, %v1156_v18  ;;  %v1704_v22 = vrot.slane %v2877_v30, %v3222_v24  ;;  %v2879_v37 = vcombine.high %v3381_v42, %v3393_v62  ;;  %v1705_v6 = vcombine.low %v1690_v11, %v3802_v9  ;;  %v3109_v30 = vld [vmem:[%s4143_s1 + $0x68] sm:$0xff]  }
 0x15b   :  { %v1592_v48 = vrot.slane %v1584_v29, %v3222_v24  ;;  %v1996_v60 = vrot.slane %v1988_v39, %v3222_v24  ;;  %v2004_v3 = vcombine.low %v3747_v17, %v3736_v51  ;;  %v1585_v34 = vcombine.low %v1576_v4, %v1583_v0  ;;  %v3110_v0 = vld [vmem:[%s4143_s1 + $0x60] sm:$0xff]  }
 0x15c   :  { %1162 = vrot.lane.b32.xlu0 %v1157_v28, %s3145_s19  ;;  %v1706_v7 = vcombine.low %v1697_v21, %v1704_v22  ;;  %v2003_v41 = vrot.slane %v2879_v37, %v3222_v24  ;;  %v813_v45 = vcombine.high %v3393_v62, %v3393_v62  ;;  %v1713_v53 = vrot.slane %v1705_v6, %v3222_v24  ;;  %v3114_v22 = vld [vmem:[%s4143_s1 + $0x40] sm:$0xff]  }
 0x15d   :  { %v2012_v56 = vrot.slane %v2004_v3, %v3222_v24  ;;  %v845_v46 = vshll.u32 %v3393_v62, 16  ;;  %v848_v13 = vshrl.u32 %v3393_v62, 16  ;;  %v1599_v10 = vrot.slane %v1585_v34, %v3222_v24 }
 0x15e   :  { %v1720_v51 = vrot.slane %v1706_v7, %v3222_v24  ;;  %v2005_v17 = vcombine.low %v1996_v60, %v2003_v41  ;;  %v853_v27 = vshll.u32 %v3397_v1, 16  ;;  %v4159_v50 = vshrl.u32 %v3381_v42, 16 }
 0x15f   :  { %v856_v19 = vshrl.u32 %v3397_v1, 16  ;;  %v861_v40 = vshll.u32 %v813_v45, 16  ;;  %v1891_v54 = vcombine.low %v749_v15, %v757_v61  ;;  %v1600_v5 = vcombine.low %v1592_v48, %v1599_v10 }
 0x160   :  { %v847_v58 = vsel %vm3487_vm14, %v4159_v50, %v845_v46  ;;  %v1721_v23 = vcombine.low %v1713_v53, %v1720_v51  ;;  %v2019_v62 = vrot.slane %v2005_v17, %v3222_v24  ;;  %v855_v8 = vsel %vm3487_vm14, %v848_v13, %v853_v27 }
 0x161   :  { %v863_v42 = vsel %vm3487_vm14, %v856_v19, %v861_v40  ;;  %v1892_v43 = vcombine.low %v765_v20, %v847_v58  ;;  %v1900_v55 = vrot.slane %v1891_v54, %v3222_v24  ;;  %1605 = vrot.lane.b32.xlu1 %v1600_v5, %s3146_s20  ;;  %v3148_v35 = vmov 0.0  }
 0x162   :  { %1726 = vrot.lane.b32.xlu0 %v1721_v23, %s3143_s17  ;;  %v1893_v1 = vcombine.low %v855_v8, %v863_v42  ;;  %3028 = vmatprep.subr.bf16.mxu1 %v3148_v35  ;;  %v2020_v18 = vcombine.low %v2012_v56, %v2019_v62  ;;  %v994_v29 = vcombine.low %v3697_v12, %v3622_v57  ;;  %v3112_v12 = vld [vmem:[%s4143_s1 + $0x50] sm:$0xff]  }
 0x163   :  { %v1907_v15 = vrot.slane %v1892_v43, %v3222_v24  ;;  %v1915_v61 = vcombine.low %v3835_v59, %v1900_v55  ;;  %3029 = vmatpush3.bf16.msra.mxu1 %v3107_v47  ;;  %3044 = vmatprep.mubr.msk.bf16.mxu1 %vm3149_vm15, %v3148_v35  ;;  %v995_v11 = vcombine.low %v3632_v32, %v3802_v9  ;;  %v3111_v32 = vld [vmem:[%s4143_s1 + $0x58] sm:$0xff]   ;;  %v3113_v9 = vld [vmem:[%s4143_s1 + $0x48] sm:$0xff]  }
 0x164   :  { %v1914_v36 = vrot.slane %v1893_v1, %v3222_v24  ;;  %3030 = vmatprep.subr.bf16.mxu1 %v3148_v35  ;;  %v3920_v39 = vrot.slane %v994_v29, %v3222_v24  ;;  %v865_v37 = vcombine.low %v3258_v63, %v3262_v2  ;;  %v4160_v3 = vcombine.low %v3234_v44, %v3246_v52  ;;  %v4162_v47 = vld [vmem:[#allocation3_spill] sm:$0xff] }
 0x165   :  { %2025 = vrot.lane.b32.xlu1 %v2020_v18, %s3144_s18  ;;  %v1923_v4 = vrot.slane %v1915_v61, %v3222_v24  ;;  %v3923_v28 = vrot.slane %v995_v11, %v3222_v24  ;;  %v897_v7 = vcombine.low %v3450_v16, %v3430_v38  ;;  %v916_v19 = vcombine.low %v3291_v26, %v3299_v31 }
 0x166   :  { %v1916_v20 = vcombine.low %v1907_v15, %v1914_v36  ;;  %v881_v60 = vrot.slane %v865_v37, %v3222_v24  ;;  %v874_v34 = vrot.slane %v4160_v3, %v3222_v24  ;;  %v4161_v5 = vcombine.low %v3277_v14, %v3287_v25 }
 0x167   :  { %3031 = vmatpush3.bf16.msra.mxu1 %v3108_v33  ;;  %v1010_v57 = vcombine.low %v3920_v39, %v3923_v28  ;;  %v911_v56 = vrot.slane %v897_v7, %v3222_v24  ;;  %v944_v40 = vrot.slane %v916_v19, %v3222_v24  ;;  %v945_v42 = vcombine.low %v4162_v47, %v3436_v49  ;;  %v3115_v28 = vld [vmem:[%s4143_s1 + $0x138] sm:$0xff]  }
 0x168   :  { %v1930_v59 = vrot.slane %v1916_v20, %v3222_v24  ;;  %3032 = vmatprep.subr.bf16.mxu1 %v3148_v35  ;;  %v896_v45 = vcombine.low %v874_v34, %v881_v60  ;;  %v937_v23 = vrot.slane %v4161_v5, %v3222_v24  ;;  %v3117_v7 = vld [vmem:[%s4143_s1 + $0xb8] sm:$0xff]   ;;  %v3150_v19 = vmov 1983009808   ;;  %v2880_v5 = vld [vmem:[%s4145_s2 + $0x1] ss:$0 sm:$0xff] }
 0x169   :  { %v953_v15 = vrot.slane %v945_v42, %v3222_v24 }
 0x16a   :  { %v1931_v21 = vcombine.low %v1923_v4, %v1930_v59  ;;  %v904_v46 = vrot.slane %v896_v45, %v3222_v24  ;;  %v946_v8 = vcombine.low %v937_v23, %v944_v40  ;;  %v3118_v45 = vld [vmem:[%s4143_s1 + $0x130] sm:$0xff]   ;;  %v2234_v40 = vunpack.c.l.s4 %v3150_v19 }
 0x16b   :  { %3033 = vmatpush3.bf16.msra.mxu1 %v3109_v30 }
 0x16c   :  { %1936 = vrot.lane.b32.xlu0 %v1931_v21, %s3147_s21  ;;  %3034 = vmatprep.subr.bf16.mxu1 %v3148_v35  ;;  %v912_v2 = vcombine.low %v904_v46, %v911_v56  ;;  %v960_v55 = vrot.slane %v946_v8, %v3222_v24  ;;  %v3122_v56 = vld [vmem:[%s4143_s1 + $0xe8] sm:$0xff]   ;;  %v4163_v8 = vld [vmem:[#allocation2_spill] sm:$0xff] }
 0x16d   :  { %v3121_v46 = vld [vmem:[%s4143_s1 + $0x128] sm:$0xff]  }
 0x16e   :  { %v961_v26 = vcombine.low %v953_v15, %v960_v55 }
 0x16f   :  { %3035 = vmatpush3.bf16.msra.mxu1 %v3110_v0 }
 0x170   :  { %3036 = vmatprep.subr.bf16.mxu1 %v3148_v35 }
 0x173   :  { %3037 = vmatpush3.bf16.msra.mxu1 %v3111_v32 }
 0x174   :  { %3038 = vmatprep.subr.bf16.mxu1 %v3148_v35 }
 0x177   :  { %3039 = vmatpush3.bf16.msra.mxu1 %v3112_v12 }
 0x178   :  { %3040 = vmatprep.subr.bf16.mxu1 %v3148_v35 }
 0x17a   :  { %v1449_v48 = vpop.permute.xlu1 %1448 }
 0x17b   :  { %3041 = vmatpush3.bf16.msra.mxu1 %v3113_v9 }
 0x17c   :  { %3042 = vmatprep.subr.bf16.mxu1 %v3148_v35 }
 0x17f   :  { %3043 = vmatpush3.bf16.msra.mxu1 %v3114_v22  ;;  %v1312_v6 = vpop.permute.xlu0 %1311 }
 0x180   :  { %3056 = vmatprep.subr.bf16.mxu1 %v3148_v35 }
 0x183   :  { %v1828_v41 = vpop.permute.xlu1 %1827 }
 0x186   :  { %v1723_v53 = vpop.permute.xlu0 %1722 }
 0x189   :  { %v2022_v63 = vpop.permute.xlu1 %2021 }
 0x195   :  { %v1159_v13 = vpop.permute.xlu0 %1158 }
 0x196   :  { %v2030_v10 = vsel %vm2027_vm0, %v912_v2, %v1159_v13  ;;  %v3125_v2 = vld [vmem:[%s4143_s1 + $0xe0] sm:$0xff]  }
 0x197   :  { %v2039_v44 = vsel %vm2037_vm1, %v2030_v10, %v1312_v6  ;;  %v3124_v13 = vld [vmem:[%s4143_s1 + $0x120] sm:$0xff]  }
 0x198   :  { %v2046_v52 = vsel %vm2044_vm2, %v2039_v44, %v1449_v48  ;;  %v3126_v10 = vld [vmem:[%s4143_s1 + $0xa0] sm:$0xff]   ;;  %v3128_v44 = vld [vmem:[%s4143_s1 + $0xd8] sm:$0xff]  }
 0x199   :  { %v1602_v38 = vpop.permute.xlu1 %1601 }
 0x19a   :  { %v2053_v16 = vsel %vm2051_vm3, %v2046_v52, %v1602_v38  ;;  %v3127_v52 = vld [vmem:[%s4143_s1 + $0x118] sm:$0xff]  }
 0x19b   :  { %v2060_v51 = vsel %vm2058_vm4, %v2053_v16, %v1723_v53  ;;  %v3120_v53 = vld [vmem:[%s4143_s1 + $0xb0] sm:$0xff]   ;;  %v3129_v38 = vld [vmem:[%s4143_s1 + $0x98] sm:$0xff]  }
 0x19c   :  { %v2067_v17 = vsel %vm2065_vm5, %v2060_v51, %v1828_v41  ;;  %v3119_v41 = vld [vmem:[%s4143_s1 + $0xf0] sm:$0xff]  }
 0x19d   :  { %v3131_v16 = vld [vmem:[%s4143_s1 + $0xd0] sm:$0xff]  }
 0x19e   :  { %v1933_v27 = vpop.permute.xlu0 %1932  ;;  %v3130_v51 = vld [vmem:[%s4143_s1 + $0x110] sm:$0xff]  }
 0x19f   :  { %v2074_v50 = vsel %vm2072_vm6, %v2067_v17, %v1933_v27  ;;  %v1314_v62 = vpop.permute.xlu1 %1313  ;;  %v3132_v17 = vld [vmem:[%s4143_s1 + $0x90] sm:$0xff]   ;;  %v3134_v27 = vld [vmem:[%s4143_s1 + $0xc8] sm:$0xff]  }
 0x1a0   :  { %v2081_v58 = vsel %vm2079_vm7, %v2074_v50, %v2022_v63  ;;  %v3123_v63 = vld [vmem:[%s4143_s1 + $0xa8] sm:$0xff]  }
 0x1a1   :  { %3045 = vmatmul.mubr.msk.bf16.vlgmr.msra.gmra.mxu1 %vm2086_vm8, %v2081_v58  ;;  %v3133_v50 = vld [vmem:[%s4143_s1 + $0x108] sm:$0xff]  }
 0x1a2   :  { %3048 = vmatprep.mubr.msk.bf16.mxu1 %vm3149_vm15, %v3148_v35  ;;  %3057 = vmatpush3.bf16.msra.mxu1 %v3115_v28  ;;  %v3135_v58 = vld [vmem:[%s4143_s1 + $0x88] sm:$0xff]  }
 0x1a3   :  { %3058 = vmatprep.subr.bf16.mxu1 %v3148_v35 }
 0x1a6   :  { %v1161_v54 = vpop.permute.xlu0 %1160  ;;  %3059 = vmatpush3.bf16.msra.mxu1 %v3118_v45 }
 0x1a7   :  { %v2033_v61 = vsel %vm2027_vm0, %v961_v26, %v1161_v54  ;;  %3060 = vmatprep.subr.bf16.mxu1 %v3148_v35  ;;  %v2235_v54 = vunpack.c.0.s8 %v2234_v40 }
 0x1a8   :  { %v1830_v1 = vpop.permute.xlu1 %1829  ;;  %v2041_v36 = vsel %vm2037_vm1, %v2033_v61, %v1314_v62 }
 0x1a9   :  { %v4081_v47 = vsub.s32 %v2235_v54, %v4163_v8 }
 0x1aa   :  { %v1451_v43 = vpop.permute.xlu0 %1450  ;;  %3061 = vmatpush3.bf16.msra.mxu1 %v3121_v46 }
 0x1ab   :  { %v2048_v14 = vsel %vm2044_vm2, %v2041_v36, %v1451_v43  ;;  %3062 = vmatprep.subr.bf16.mxu1 %v3148_v35 }
 0x1ae   :  { %3063 = vmatpush3.bf16.msra.mxu1 %v3124_v13 }
 0x1af   :  { %3064 = vmatprep.subr.bf16.mxu1 %v3148_v35 }
 0x1b2   :  { %3065 = vmatpush3.bf16.msra.mxu1 %v3127_v52 }
 0x1b3   :  { %v1725_v31 = vpop.permute.xlu0 %1724  ;;  %3066 = vmatprep.subr.bf16.mxu1 %v3148_v35 }
 0x1b5   :  { %v1604_v18 = vpop.permute.xlu1 %1603 }
 0x1b6   :  { %v2055_v25 = vsel %vm2051_vm3, %v2048_v14, %v1604_v18  ;;  %3067 = vmatpush3.bf16.msra.mxu1 %v3130_v51 }
 0x1b7   :  { %v2062_v49 = vsel %vm2058_vm4, %v2055_v25, %v1725_v31  ;;  %3068 = vmatprep.subr.bf16.mxu1 %v3148_v35 }
 0x1b8   :  { %v2069_v4 = vsel %vm2065_vm5, %v2062_v49, %v1830_v1 }
 0x1b9   :  { %v2024_v20 = vpop.permute.xlu1 %2023 }
 0x1ba   :  { %v1453_v33 = vpop.permute.xlu0 %1452  ;;  %3069 = vmatpush3.bf16.msra.mxu1 %v3133_v50 }
 0x1bb   :  { %3070 = vmatprep.subr.bf16.mxu1 %v3148_v35 }
 0x1bd   :  { %v1316_v30 = vpop.permute.xlu1 %1315 }
 0x1c7   :  { %v1935_v59 = vpop.permute.xlu0 %1934 }
 0x1c8   :  { %v2076_v24 = vsel %vm2072_vm6, %v2069_v4, %v1935_v59  ;;  %v1832_v11 = vpop.permute.xlu1 %1831 }
 0x1c9   :  { %v2083_v29 = vsel %vm2079_vm7, %v2076_v24, %v2024_v20 }
 0x1ca   :  { %3049 = vmatmul.mubr.msk.bf16.gmra.mxu1 %vm2086_vm8, %v2083_v29 }
 0x1cb   :  { %3052 = vmatprep.mubr.msk.bf16.mxu1 %vm3149_vm15, %v3148_v35 }
 0x1ce   :  { %v1163_v21 = vpop.permute.xlu0 %1162 }
 0x1cf   :  { %v2036_v0 = vsel %vm2027_vm0, %v1010_v57, %v1163_v21  ;;  %v3116_v57 = vld [vmem:[%s4143_s1 + $0xf8] sm:$0xff]  }
 0x1d0   :  { %v2043_v32 = vsel %vm2037_vm1, %v2036_v0, %v1316_v30  ;;  %2969 = vmatprep.subr.bf16.mxu0 %v3116_v57 }
 0x1d1   :  { %v2050_v12 = vsel %vm2044_vm2, %v2043_v32, %v1453_v33  ;;  %2970 = vmatpush3.bf16.msra.mxu0 %v3117_v7  ;;  %v4093_v7 = vsub.s32 0, %v4163_v8 }
 0x1d2   :  { %2971 = vmatprep.subr.bf16.mxu0 %v3119_v41 }
 0x1d3   :  { %v1606_v9 = vpop.permute.xlu1 %1605 }
 0x1d4   :  { %v2057_v22 = vsel %vm2051_vm3, %v2050_v12, %v1606_v9  ;;  %v1727_v37 = vpop.permute.xlu0 %1726 }
 0x1d5   :  { %v2064_v48 = vsel %vm2058_vm4, %v2057_v22, %v1727_v37  ;;  %2972 = vmatpush3.bf16.msra.mxu0 %v3120_v53 }
 0x1d6   :  { %v2071_v6 = vsel %vm2065_vm5, %v2064_v48, %v1832_v11  ;;  %2973 = vmatprep.subr.bf16.mxu0 %v3122_v56 }
 0x1d7   :  { %v2026_v60 = vpop.permute.xlu1 %2025 }
 0x1d9   :  { %2974 = vmatpush3.bf16.msra.mxu0 %v3123_v63 }
 0x1da   :  { %2975 = vmatprep.subr.bf16.mxu0 %v3125_v2 }
 0x1dd   :  { %2976 = vmatpush3.bf16.msra.mxu0 %v3126_v10 }
 0x1de   :  { %v1937_v3 = vpop.permute.xlu0 %1936  ;;  %2977 = vmatprep.subr.bf16.mxu0 %v3128_v44 }
 0x1df   :  { %v2078_v34 = vsel %vm2072_vm6, %v2071_v6, %v1937_v3 }
 0x1e0   :  { %v2085_v39 = vsel %vm2079_vm7, %v2078_v34, %v2026_v60 }
 0x1e1   :  { %3053 = vmatmul.mubr.msk.bf16.gmra.mxu1 %vm2086_vm8, %v2085_v39  ;;  %2978 = vmatpush3.bf16.msra.mxu0 %v3129_v38 }
 0x1e2   :  { %3072 = vmatprep.mubr.msk.bf16.mxu1 %vm3149_vm15, %v3148_v35  ;;  %2979 = vmatprep.subr.bf16.mxu0 %v3131_v16 }
 0x1e5   :  { %2980 = vmatpush3.bf16.msra.mxu0 %v3132_v17 }
 0x1e6   :  { %2981 = vmatprep.subr.bf16.mxu0 %v3134_v27 }
 0x1e9   :  { %2982 = vmatpush3.bf16.msra.mxu0 %v3135_v58 }
 0x261   :  { %v2197_v23 = vpop.f32.mrf.mxu1 }
 0x262   :  { %v2198_v62 = vadd.f32 %v2880_v5, %v2197_v23 }
 0x263   :  { %v3046_v42 = vpop.f32.mrf.mxu1 }
 0x264   :  { %v2220_v43 = vmax.f32 %v2198_v62, 0.0 }
 0x265   :  { %v2200_v55 = vpop.f32.mrf.mxu1 }
 0x266   :  { %v2232_v1 = vcombine.high %v2220_v43, %v2220_v43  ;;  %v2239_v15 = vrot.slane %v2220_v43, %v4081_v47  ;;  %v2201_v26 = vadd.f32 %v2880_v5, %v2200_v55 }
 0x267   :  { %v3047_v35 = vpop.f32.mrf.mxu1 }
 0x268   :  { %v2246_v31 = vrot.slane %v2232_v1, %v4081_v47  ;;  %v2221_v61 = vmax.f32 %v2201_v26, 0.0  ;;  %v2247_v18 = vcombine.high %v2239_v15, %v2239_v15 }
 0x26a   :  { %v2248_v36 = vcombine.high %v2246_v31, %v2246_v31  ;;  %v2256_v14 = vrot.slane %v2221_v61, %v4081_v47  ;;  %v2249_v4 = vcombine.high %v2221_v61, %v2221_v61 }
 0x26c   :  { %v2358_v25 = vmax.f32 %v2239_v15, %v2248_v36  ;;  %v2264_v33 = vcombine.high %v2256_v14, %v2256_v14  ;;  %v4086_v20 = vmax.f32 %v2247_v18, %v2256_v14  ;;  %v2263_v29 = vrot.slane %v2249_v4, %v4081_v47 }
 0x26e   :  { %v2360_v49 = vmax.f32 %v2246_v31, %v2264_v33  ;;  %v2265_v9 = vcombine.high %v2263_v29, %v2263_v29  ;;  %v2892_v3 = vrot.slane %v2358_v25, 9  ;;  %v2894_v18 = vrot.slane %v4086_v20, 9 }
 0x270   :  { %v2372_v57 = vmax.f32 %v2358_v25, %v2892_v3  ;;  %v2896_v58 = vrot.slane %v2360_v49, 9 }
 0x272   :  { %v2435_v53 = vrot.slane %v2372_v57, %v4093_v7  ;;  %v2392_v1 = vmax.f32 %v2360_v49, %v2896_v58 }
 0x28a   :  { %v2205_v59 = vpop.f32.mrf.mxu1 }
 0x28b   :  { %v2206_v30 = vadd.f32 %v2880_v5, %v2205_v59 }
 0x28c   :  { %v3050_v24 = vpop.f32.mrf.mxu1 }
 0x28d   :  { %v2222_v11 = vmax.f32 %v2206_v30, 0.0  ;;  %v2462_v30 = vrot.slane %v2392_v1, %v4093_v7 }
 0x28e   :  { %v2208_v21 = vpop.f32.mrf.mxu1 }
 0x28f   :  { %v2266_v0 = vcombine.high %v2222_v11, %v2222_v11  ;;  %v2209_v32 = vadd.f32 %v2880_v5, %v2208_v21  ;;  %v2273_v46 = vrot.slane %v2222_v11, %v4081_v47 }
 0x290   :  { %v3051_v12 = vpop.f32.mrf.mxu1 }
 0x291   :  { %v2280_v22 = vrot.slane %v2266_v0, %v4081_v47  ;;  %v2223_v37 = vmax.f32 %v2209_v32, 0.0  ;;  %v2281_v52 = vcombine.high %v2273_v46, %v2273_v46  ;;  %v3137_v32 = vld [vmem:[%s4143_s1 + $0xc0] sm:$0xff]  }
 0x292   :  { %v3138_v12 = vld [vmem:[%s4143_s1 + $0x80] sm:$0xff]   ;;  %2983 = vmatprep.subr.bf16.mxu0 %v3137_v32 }
 0x293   :  { %v2395_v48 = vmax.f32 %v2265_v9, %v2280_v22  ;;  %v2283_v6 = vcombine.high %v2223_v37, %v2223_v37  ;;  %v2290_v34 = vrot.slane %v2223_v37, %v4081_v47  ;;  %v2282_v38 = vcombine.high %v2280_v22, %v2280_v22  ;;  %2984 = vmatpush3.bf16.msra.mxu0 %v3138_v12 }
 0x294   :  { %v2394_v8 = vmax.f32 %v2263_v29, %v2281_v52  ;;  %v2382_v9 = vmax.f32 %v4086_v20, %v2894_v18 }
 0x295   :  { %v2297_v60 = vrot.slane %v2283_v6, %v4081_v47  ;;  %v2298_v51 = vcombine.high %v2290_v34, %v2290_v34  ;;  %v2396_v42 = vmax.f32 %v2273_v46, %v2282_v38  ;;  %v2900_v35 = vrot.slane %v2395_v48, 9 }
 0x296   :  { %v2898_v36 = vrot.slane %v2394_v8, 9  ;;  %v2448_v20 = vrot.slane %v2382_v9, %v4093_v7 }
 0x297   :  { %v2299_v39 = vcombine.high %v2297_v60, %v2297_v60  ;;  %v2902_v25 = vrot.slane %v2396_v42, 9  ;;  %v2418_v29 = vmax.f32 %v2395_v48, %v2900_v35 }
 0x298   :  { %v2408_v22 = vmax.f32 %v2394_v8, %v2898_v36 }
 0x299   :  { %v2361_v28 = vmax.f32 %v2290_v34, %v2299_v39  ;;  %v2428_v48 = vmax.f32 %v2396_v42, %v2902_v25  ;;  %v2488_v57 = vrot.slane %v2418_v29, %v4093_v7  ;;  %v2904_v42 = vld [vmem:[%s4145_s2 + $0x2] ss:$0 sm:$0xff] }
 0x29b   :  { %v2893_v41 = vrot.slane %v2361_v28, 9 }
 0x29d   :  { %v2373_v45 = vmax.f32 %v2361_v28, %v2893_v41 }
 0x29f   :  { %v2439_v56 = vrot.slane %v2373_v45, %v4093_v7  ;;  %v2474_v45 = vrot.slane %v2408_v22, %v4093_v7 }
 0x2a1   :  { %v2213_v63 = vpop.f32.mrf.mxu1  ;;  %v4099_v2 = vsel %vm2440_vm9, %v2439_v56, %v2435_v53  ;;  %v2500_v56 = vrot.slane %v2428_v48, %v4093_v7 }
 0x2a2   :  { %v2214_v13 = vadd.f32 %v2880_v5, %v2213_v63 }
 0x2a3   :  { %v3054_v10 = vpop.f32.mrf.mxu1 }
 0x2a4   :  { %v2224_v44 = vmax.f32 %v2214_v13, 0.0 }
 0x2a5   :  { %v2216_v16 = vpop.f32.mrf.mxu1 }
 0x2a6   :  { %v2300_v17 = vcombine.high %v2224_v44, %v2224_v44  ;;  %v2307_v27 = vrot.slane %v2224_v44, %v4081_v47  ;;  %v2217_v50 = vadd.f32 %v2880_v5, %v2216_v16 }
 0x2a7   :  { %v3055_v19 = vpop.f32.mrf.mxu1 }
 0x2a8   :  { %v2314_v40 = vrot.slane %v2300_v17, %v4081_v47  ;;  %v2315_v54 = vcombine.high %v2307_v27, %v2307_v27  ;;  %v2362_v23 = vmax.f32 %v2298_v51, %v2307_v27  ;;  %v2225_v62 = vmax.f32 %v2217_v50, 0.0 }
 0x2aa   :  { %v2363_v43 = vmax.f32 %v2297_v60, %v2315_v54  ;;  %v2317_v55 = vcombine.high %v2225_v62, %v2225_v62  ;;  %v2895_v15 = vrot.slane %v2362_v23, 9  ;;  %v2324_v26 = vrot.slane %v2225_v62, %v4081_v47 }
 0x2ab   :  { %v2316_v31 = vcombine.high %v2314_v40, %v2314_v40 }
 0x2ac   :  { %v2897_v61 = vrot.slane %v2363_v43, 9  ;;  %v2331_v5 = vrot.slane %v2317_v55, %v4081_v47  ;;  %v2332_v14 = vcombine.high %v2324_v26, %v2324_v26  ;;  %v2383_v24 = vmax.f32 %v2362_v23, %v2895_v15  ;;  %v3136_v47 = vld [vmem:[%s4143_s1 + $0x100] sm:$0xff]  }
 0x2ad   :  { %3071 = vmatpush3.bf16.msra.mxu1 %v3136_v47 }
 0x2ae   :  { %v2393_v33 = vmax.f32 %v2363_v43, %v2897_v61  ;;  %v2333_v4 = vcombine.high %v2331_v5, %v2331_v5  ;;  %v2398_v59 = vmax.f32 %v2316_v31, %v2331_v5  ;;  %v2397_v49 = vmax.f32 %v2314_v40, %v2332_v14 }
 0x2af   :  { %v2452_v34 = vrot.slane %v2383_v24, %v4093_v7 }
 0x2b0   :  { %v2466_v11 = vrot.slane %v2393_v33, %v4093_v7  ;;  %v2399_v21 = vmax.f32 %v2324_v26, %v2333_v4  ;;  %v2901_v0 = vrot.slane %v2398_v59, 9  ;;  %v2899_v37 = vrot.slane %v2397_v49, 9 }
 0x2b1   :  { %v2453_v13 = vsel %vm2440_vm9, %v2452_v34, %v2448_v20 }
 0x2b2   :  { %v2419_v6 = vmax.f32 %v2398_v59, %v2901_v0  ;;  %v2903_v60 = vrot.slane %v2399_v21, 9  ;;  %v2467_v3 = vsel %vm2440_vm9, %v2466_v11, %v2462_v30  ;;  %v2409_v39 = vmax.f32 %v2397_v49, %v2899_v37 }
 0x2b4   :  { %v2429_v28 = vmax.f32 %v2399_v21, %v2903_v60  ;;  %v2492_v41 = vrot.slane %v2419_v6, %v4093_v7  ;;  %v2478_v53 = vrot.slane %v2409_v39, %v4093_v7 }
 0x2b6   :  { %v2504_v46 = vrot.slane %v2429_v28, %v4093_v7  ;;  %v2493_v63 = vsel %vm2440_vm9, %v2492_v41, %v2488_v57  ;;  %v2479_v10 = vsel %vm2440_vm9, %v2478_v53, %v2474_v45 }
 0x2b7   :  { %v3088_v44 = vpack.i.bf16 %v2453_v13, %v2479_v10 }
 0x2b8   :  { %v2505_v52 = vsel %vm2440_vm9, %v2504_v46, %v2500_v56 }
 0x2b9   :  { %2506 = vrot.lane.b32.xlu1 %v2505_v52, %s3144_s18  ;;  %3089 = vrot.lane.b32.xlu0 %v3088_v44, %s3144_s18 }
 0x32b   :  { %v2507_v38 = vpop.permute.xlu1 %2506  ;;  %v3090_v16 = vpop.permute.xlu0 %3089 }
 0x32c   :  { %v2511_v51 = vsel %vm2079_vm7, %v2493_v63, %v2507_v38  ;;  %v3092_v17 = vunpack.i.h.bf16 %v3090_v16  ;;  %v3091_v7 = vunpack.i.l.bf16 %v3090_v16 }
 0x32d   :  { %v2514_v27 = vpack.c.bf16 %v2511_v51, %v2511_v51 }
 0x32e   :  { %v2509_v50 = vsel %vm2079_vm7, %v4099_v2, %v3092_v17  ;;  %v2510_v58 = vsel %vm2079_vm7, %v2467_v3, %v3091_v7 }
 0x32f   :  { %3073 = vmatmul.mubr.msk.bf16.vlgmr.msra.gmra.mxu1 %vm2515_vm10, %v2514_v27  ;;  %v2512_v19 = vpack.c.bf16 %v2509_v50, %v2509_v50  ;;  %v2513_v40 = vpack.c.bf16 %v2510_v58, %v2510_v58 }
 0x331   :  { %2929 = vmatprep.mubr.msk.bf16.mxu0 %vm2515_vm10, %v2513_v40 }
 0x332   :  { %2930 = vmatmul.mubr.msk.bf16.vlgmr.msra.gmra.mxu0 %vm2515_vm10, %v2512_v19 }
 0x3ef   :  { %v2796_v54 = vpop.f32.mrf.mxu1 }
 0x3f1   :  { %v3074_v23 = vpop.f32.mrf.mxu1 }
 0x3f2   :  { %v2985_v62 = vpop.f32.mrf.mxu0 }
 0x3f3   :  { %v2799_v8 = vpop.f32.mrf.mxu1 }
 0x3f4   :  { %v2986_v43 = vpop.f32.mrf.mxu0 }
 0x3f5   :  { %v3075_v55 = vpop.f32.mrf.mxu1  ;;  %v2987_v1 = vadd.f32 %v2986_v43, %v2985_v62 }
 0x3f6   :  { %v2988_v15 = vpop.f32.mrf.mxu0 }
 0x3f7   :  { %v2757_v2 = vadd.f32 %v2987_v1, %v2904_v42 }
 0x3f8   :  { %v2989_v26 = vpop.f32.mrf.mxu0 }
 0x3f9   :  { %v2797_v35 = vadd.f32 %v2796_v54, %v2757_v2 }
 0x3fb   :  { %2802 = vst [vmem:[%s4146_s3] sm:$0xff] %v2797_v35 }

</bundles_post_ra>
